<compile_context>
chip_gen: v7x
topology: tpu7x:2x2x1
jax: 0.10.0
libtpu: 0.0.40
codegen_flags: <defaults>
</compile_context>

<pallas_src>
import functools

import jax
import jax.numpy as jnp
from jax import lax
from jax.experimental import pallas as pl
from jax.experimental.pallas import tpu as pltpu


def _cmm(w, p):
    """Pointwise-conv contraction (O, I) @ (I, L) -> (O, L) in f32.

    Tiny contraction dims (C=4 / mip=8) stay on the VPU as an exact unrolled
    outer-product sum; realistic dims (>= 32) lower to the MXU via jnp.dot.
    """
    _, i_dim = w.shape
    if i_dim >= 32:
        return jnp.dot(w, p, preferred_element_type=jnp.float32,
                       precision=lax.Precision.HIGHEST)
    acc = w[:, 0:1] * p[0:1, :]
    for i in range(1, i_dim):
        acc = acc + w[:, i:i + 1] * p[i:i + 1, :]
    return acc


def _coord_att_kernel(x_ref, w1_ref, s_ref, t_ref, wh_ref, bh_ref,
                      ww_ref, bw_ref, o_ref, ph_scr, ah_scr, gate_scr,
                      *, C, H, W, Hc):
    bn = x_ref.shape[0]
    span = Hc * W                 # lane-dense chunk width (multiple of 128 when possible)
    n_chunks = H // Hc
    inv_w = 1.0 / float(W)
    inv_h = 1.0 / float(H)

    # Small parameter tensors, loaded once per grid step.
    w1 = w1_ref[...]              # (mip, C)
    s = s_ref[...]                # (mip, 1)   folded BN scale
    t = t_ref[...]                # (mip, 1)   folded conv1-bias + BN shift
    wh = wh_ref[...]              # (C, mip)
    bh = bh_ref[...]              # (C, 1)
    ww = ww_ref[...]              # (C, mip)
    bw = bw_ref[...]              # (C, 1)

    def squeeze(p):
        z = _cmm(w1, p) * s + t                                   # conv1 + folded BN
        return z * (jnp.clip(z + 3.0, 0.0, 6.0) * (1.0 / 6.0))    # h_swish

    for b in range(bn):           # static, small batch-pack loop
        # ---- pass 1: adaptive average pools (x stays native dtype; one (C, W)
        #      row slice is cast to f32 at a time, never the whole slab) ----
        pw = jnp.zeros((C, W), jnp.float32)
        for h in range(H):
            row = x_ref[b, :, h * W:(h + 1) * W].astype(jnp.float32)   # (C, W)
            pw = pw + row
            ph_scr[:, h:h + 1] = jnp.sum(row, axis=1, keepdims=True)
        ph = ph_scr[...] * inv_w                                   # (C, H) mean over W
        pw = pw * inv_h                                            # (C, W) mean over H

        # ---- squeeze (conv1 + BN + h_swish) and the two sigmoid gates.
        # With eval-mode BN the concatenated halves are independent, so no
        # concat/split is needed. ----
        yh = squeeze(ph)                                           # (mip, H)
        yw = squeeze(pw)                                           # (mip, W)
        ah_scr[...] = 1.0 / (1.0 + jnp.exp(-(_cmm(wh, yh) + bh)))  # (C, H)
        aw = 1.0 / (1.0 + jnp.exp(-(_cmm(ww, yw) + bw)))           # (C, W)

        # ---- pass 2: chunked, lane-dense gating epilogue.  The rank-1 gate
        # a_h[c, h] * a_w[c, w] is assembled per chunk into a small scratch;
        # no (C, H, W) broadcasts and no full f32 copy of x are ever live. ----
        @pl.loop(0, n_chunks)
        def _(j):
            base = pl.multiple_of(j * span, span)
            for r in range(Hc):                                    # static
                ah_col = ah_scr[:, pl.ds(j * Hc + r, 1)]           # (C, 1)
                gate_scr[:, r * W:(r + 1) * W] = ah_col * aw       # (C, W)
            xc = x_ref[b, :, pl.ds(base, span)].astype(jnp.float32)
            o_ref[b, :, pl.ds(base, span)] = (
                xc * gate_scr[...]).astype(o_ref.dtype)


def _pick_batch_block(n, per_sample_bytes, budget=16 * 2 ** 20):
    """Samples per grid step: keep pipelined in+out buffers under budget and
    prefer >= 4 (then >= 2) grid steps so prefetch/writeback overlap exists."""
    divisors = [d for d in range(1, n + 1) if n % d == 0]
    feasible = [d for d in divisors if 4 * d * per_sample_bytes <= budget] or [1]
    for min_steps in (4, 2, 1):
        cand = [d for d in feasible if n // d >= min_steps]
        if cand:
            return max(cand)
    return 1


def _pick_chunk_rows(C, H, W, budget=2 * 2 ** 20):
    """Rows per epilogue chunk: Hc | H, chunk f32 bytes under budget, and
    prefer a lane span (Hc*W) that is a multiple of 128 (unmasked vst)."""
    divisors = [d for d in range(1, H + 1) if H % d == 0]
    ok = [d for d in divisors if C * d * W * 4 <= budget] or [1]
    aligned = [d for d in ok if (d * W) % 128 == 0]
    return max(aligned) if aligned else max(ok)


def coord_att(x, params, eps=1e-5):
    """CoordAtt forward.  x: (N, C, H, W).  params: conv1 / bn1 / conv_h / conv_w."""
    N, C, H, W = x.shape
    L = H * W
    w1 = params["w1"]            # (mip, C)   1x1 conv weight (kernel dims squeezed)
    b1 = params["b1"]            # (mip,)
    gamma = params["gamma"]      # (mip,)     BN weight
    beta = params["beta"]        # (mip,)     BN bias
    rmean = params["rmean"]      # (mip,)     BN running mean
    rvar = params["rvar"]        # (mip,)     BN running var
    wh = params["wh"]            # (C, mip)
    bh = params["bh"]            # (C,)
    ww = params["ww"]            # (C, mip)
    bw = params["bw"]            # (C,)
    mip = w1.shape[0]

    # Fold conv1 bias + eval-mode BatchNorm into a per-channel scale/shift.
    scale = gamma / jnp.sqrt(rvar + eps)                   # (mip,)
    shift = (b1 - rmean) * scale + beta                    # (mip,)
    s2 = scale.reshape(mip, 1).astype(jnp.float32)
    t2 = shift.reshape(mip, 1).astype(jnp.float32)
    bh2 = bh.reshape(C, 1).astype(jnp.float32)
    bw2 = bw.reshape(C, 1).astype(jnp.float32)
    w1f = w1.astype(jnp.float32)
    whf = wh.astype(jnp.float32)
    wwf = ww.astype(jnp.float32)

    item = jnp.dtype(x.dtype).itemsize
    bn = _pick_batch_block(N, C * L * item)
    hc = _pick_chunk_rows(C, H, W)
    span = hc * W

    # Lane-dense view: (N, C, H*W) -- a free metadata reshape in the wrapper.
    x_flat = x.reshape(N, C, L)

    kernel = functools.partial(_coord_att_kernel, C=C, H=H, W=W, Hc=hc)

    def full_spec(shape):
        return pl.BlockSpec(shape, lambda n: (0,) * len(shape))

    grid = (N // bn,)

    flops = int(5 * N * C * L + 4 * N * mip * C * (H + W))
    transcendentals = int(N * C * (H + W))
    bytes_accessed = int(2 * N * C * L * item + 4 * (2 * mip * C + 2 * mip + 2 * C) * 4)

    vmem_need = (4 * bn * C * L * item          # double-buffered in + out blocks
                 + 12 * C * span * 4            # gate scratch + chunk temporaries
                 + 4 * C * (H + W) * 4          # pooled / gate vectors
                 + (2 << 20))                   # slack
    vmem_limit = int(min(64 * 2 ** 20, max(32 * 2 ** 20, vmem_need)))

    out_flat = pl.pallas_call(
        kernel,
        out_shape=jax.ShapeDtypeStruct((N, C, L), x.dtype),
        grid_spec=pltpu.PrefetchScalarGridSpec(
            num_scalar_prefetch=0,
            grid=grid,
            in_specs=[
                pl.BlockSpec((bn, C, L), lambda n: (n, 0, 0)),
                full_spec((mip, C)),
                full_spec((mip, 1)),
                full_spec((mip, 1)),
                full_spec((C, mip)),
                full_spec((C, 1)),
                full_spec((C, mip)),
                full_spec((C, 1)),
            ],
            out_specs=pl.BlockSpec((bn, C, L), lambda n: (n, 0, 0)),
            scratch_shapes=[
                pltpu.VMEM((C, H), jnp.float32),     # ph  (pool over W)
                pltpu.VMEM((C, H), jnp.float32),     # a_h gate
                pltpu.VMEM((C, span), jnp.float32),  # per-chunk rank-1 gate
            ],
        ),
        compiler_params=pltpu.CompilerParams(
            dimension_semantics=("parallel",),
            vmem_limit_bytes=vmem_limit,
        ),
        cost_estimate=pl.CostEstimate(
            flops=flops,
            transcendentals=transcendentals,
            bytes_accessed=bytes_accessed,
        ),
    )(x_flat, w1f, s2, t2, whf, bh2, wwf, bw2)

    return out_flat.reshape(N, C, H, W)


def coord_att_ref(x, params, eps=1e-5):
    """Pure-JAX reference mirroring the PyTorch forward (eval-mode BN)."""
    w1, b1 = params["w1"], params["b1"]
    gamma, beta = params["gamma"], params["beta"]
    rmean, rvar = params["rmean"], params["rvar"]
    wh, bh = params["wh"], params["bh"]
    ww, bw = params["ww"], params["bw"]
    n, c, h, w = x.shape
    x_h = jnp.mean(x, axis=3, keepdims=True)                          # (n,c,h,1)
    x_w = jnp.mean(x, axis=2, keepdims=True).transpose(0, 1, 3, 2)    # (n,c,w,1)
    y = jnp.concatenate([x_h, x_w], axis=2)                           # (n,c,h+w,1)
    y = jnp.einsum("oc,nchw->nohw", w1, y, precision="highest") \
        + b1[None, :, None, None]
    y = (y - rmean[None, :, None, None]) / jnp.sqrt(rvar[None, :, None, None] + eps)
    y = y * gamma[None, :, None, None] + beta[None, :, None, None]
    y = y * jnp.clip(y + 3.0, 0.0, 6.0) / 6.0                         # h_swish
    y_h, y_w = y[:, :, :h, :], y[:, :, h:, :]
    y_w = y_w.transpose(0, 1, 3, 2)
    a_h = jax.nn.sigmoid(
        jnp.einsum("oc,nchw->nohw", wh, y_h, precision="highest")
        + bh[None, :, None, None])
    a_w = jax.nn.sigmoid(
        jnp.einsum("oc,nchw->nohw", ww, y_w, precision="highest")
        + bw[None, :, None, None])
    return x * a_w * a_h


if __name__ == "__main__":
    key = jax.random.PRNGKey(0)
    N, C, H, W = 2, 4, 16, 16
    reduction = 32
    mip = max(8, C // reduction)

    keys = jax.random.split(key, 11)
    x = jax.random.normal(keys[0], (N, C, H, W), dtype=jnp.float32)
    params = {
        "w1": jax.random.normal(keys[1], (mip, C), jnp.float32) * 0.5,
        "b1": jax.random.normal(keys[2], (mip,), jnp.float32) * 0.1,
        "gamma": 1.0 + 0.1 * jax.random.normal(keys[3], (mip,), jnp.float32),
        "beta": 0.1 * jax.random.normal(keys[4], (mip,), jnp.float32),
        "rmean": 0.1 * jax.random.normal(keys[5], (mip,), jnp.float32),
        "rvar": jnp.abs(1.0 + 0.1 * jax.random.normal(keys[6], (mip,), jnp.float32)),
        "wh": jax.random.normal(keys[7], (C, mip), jnp.float32) * 0.5,
        "bh": jax.random.normal(keys[8], (C,), jnp.float32) * 0.1,
        "ww": jax.random.normal(keys[9], (C, mip), jnp.float32) * 0.5,
        "bw": jax.random.normal(keys[10], (C,), jnp.float32) * 0.1,
    }

    out = coord_att(x, params)
    out = jax.block_until_ready(out)

    ref = coord_att_ref(x, params)
    assert out.shape == x.shape and out.dtype == x.dtype
    max_err = float(jnp.max(jnp.abs(out - ref)))
    assert jnp.allclose(out, ref, atol=1e-4, rtol=1e-4), f"mismatch, max_err={max_err}"

    print("KERNEL_OK")
</pallas_src>

<mosaic_0001>
module attributes {stable_mosaic.version = 11 : i64} {
  func.func @_coord_att_kernel(%arg0: i32, %arg1: memref<1x4x256xf32, #tpu.memory_space<vmem>>, %arg2: memref<8x4xf32, #tpu.memory_space<vmem>>, %arg3: memref<8x1xf32, #tpu.memory_space<vmem>>, %arg4: memref<8x1xf32, #tpu.memory_space<vmem>>, %arg5: memref<4x8xf32, #tpu.memory_space<vmem>>, %arg6: memref<4x1xf32, #tpu.memory_space<vmem>>, %arg7: memref<4x8xf32, #tpu.memory_space<vmem>>, %arg8: memref<4x1xf32, #tpu.memory_space<vmem>>, %arg9: memref<1x4x256xf32, #tpu.memory_space<vmem>>, %arg10: memref<4x16xf32, #tpu.memory_space<vmem>>, %arg11: memref<4x16xf32, #tpu.memory_space<vmem>>, %arg12: memref<4x256xf32, #tpu.memory_space<vmem>>) attributes {dimension_semantics = [#tpu.dimension_semantics<parallel>], iteration_bounds = array<i64: 2>, scalar_prefetch = 0 : i64, scratch_operands = 3 : i64, tpu.core_type = #tpu.core_type<tc>, window_params = [{transform_indices = @transform_0, window_bounds = array<i64: 1, 4, 256>}, {pipeline_mode = #tpu.pipeline_mode<synchronous>, transform_indices = @transform_1, window_bounds = array<i64: 8, 4>}, {pipeline_mode = #tpu.pipeline_mode<synchronous>, transform_indices = @transform_2, window_bounds = array<i64: 8, 1>}, {pipeline_mode = #tpu.pipeline_mode<synchronous>, transform_indices = @transform_3, window_bounds = array<i64: 8, 1>}, {pipeline_mode = #tpu.pipeline_mode<synchronous>, transform_indices = @transform_4, window_bounds = array<i64: 4, 8>}, {pipeline_mode = #tpu.pipeline_mode<synchronous>, transform_indices = @transform_5, window_bounds = array<i64: 4, 1>}, {pipeline_mode = #tpu.pipeline_mode<synchronous>, transform_indices = @transform_6, window_bounds = array<i64: 4, 8>}, {pipeline_mode = #tpu.pipeline_mode<synchronous>, transform_indices = @transform_7, window_bounds = array<i64: 4, 1>}, {transform_indices = @transform_8, window_bounds = array<i64: 1, 4, 256>}]} {
    %c0 = arith.constant 0 : index
    %c0_0 = arith.constant 0 : index
    %0 = vector.load %arg2[%c0, %c0_0] : memref<8x4xf32, #tpu.memory_space<vmem>>, vector<8x4xf32>
    %c0_1 = arith.constant 0 : index
    %c0_2 = arith.constant 0 : index
    %1 = vector.load %arg3[%c0_1, %c0_2] : memref<8x1xf32, #tpu.memory_space<vmem>>, vector<8x1xf32>
    %c0_3 = arith.constant 0 : index
    %c0_4 = arith.constant 0 : index
    %2 = vector.load %arg4[%c0_3, %c0_4] : memref<8x1xf32, #tpu.memory_space<vmem>>, vector<8x1xf32>
    %c0_5 = arith.constant 0 : index
    %c0_6 = arith.constant 0 : index
    %3 = vector.load %arg5[%c0_5, %c0_6] : memref<4x8xf32, #tpu.memory_space<vmem>>, vector<4x8xf32>
    %c0_7 = arith.constant 0 : index
    %c0_8 = arith.constant 0 : index
    %4 = vector.load %arg6[%c0_7, %c0_8] : memref<4x1xf32, #tpu.memory_space<vmem>>, vector<4x1xf32>
    %c0_9 = arith.constant 0 : index
    %c0_10 = arith.constant 0 : index
    %5 = vector.load %arg7[%c0_9, %c0_10] : memref<4x8xf32, #tpu.memory_space<vmem>>, vector<4x8xf32>
    %c0_11 = arith.constant 0 : index
    %c0_12 = arith.constant 0 : index
    %6 = vector.load %arg8[%c0_11, %c0_12] : memref<4x1xf32, #tpu.memory_space<vmem>>, vector<4x1xf32>
    %cst = arith.constant 0.000000e+00 : f32
    %7 = vector.broadcast %cst : f32 to vector<4x16xf32>
    %c0_13 = arith.constant 0 : index
    %c0_14 = arith.constant 0 : index
    %c0_15 = arith.constant 0 : index
    %8 = vector.load %arg1[%c0_13, %c0_14, %c0_15] : memref<1x4x256xf32, #tpu.memory_space<vmem>>, vector<1x4x16xf32>
    %9 = vector.shape_cast %8 : vector<1x4x16xf32> to vector<4x16xf32>
    %10 = arith.addf %7, %9 : vector<4x16xf32>
    %cst_16 = arith.constant dense<0.000000e+00> : vector<4xf32>
    %11 = vector.multi_reduction <add>, %9, %cst_16 [1] : vector<4x16xf32> to vector<4xf32>
    %12 = vector.shape_cast %11 : vector<4xf32> to vector<4x1xf32>
    %c0_17 = arith.constant 0 : index
    %c0_18 = arith.constant 0 : index
    %13 = vector.load %arg10[%c0_17, %c0_18] : memref<4x16xf32, #tpu.memory_space<vmem>>, vector<4x1xf32>
    tpu.vector_store %arg10[%c0_17, %c0_18], %12 {strides = array<i32>} : memref<4x16xf32, #tpu.memory_space<vmem>>, vector<4x1xf32>,
    %c0_19 = arith.constant 0 : index
    %c0_20 = arith.constant 0 : index
    %c16 = arith.constant 16 : index
    %14 = vector.load %arg1[%c0_19, %c0_20, %c16] : memref<1x4x256xf32, #tpu.memory_space<vmem>>, vector<1x4x16xf32>
    %15 = vector.shape_cast %14 : vector<1x4x16xf32> to vector<4x16xf32>
    %16 = arith.addf %10, %15 : vector<4x16xf32>
    %cst_21 = arith.constant dense<0.000000e+00> : vector<4xf32>
    %17 = vector.multi_reduction <add>, %15, %cst_21 [1] : vector<4x16xf32> to vector<4xf32>
    %18 = vector.shape_cast %17 : vector<4xf32> to vector<4x1xf32>
    %c0_22 = arith.constant 0 : index
    %c1 = arith.constant 1 : index
    %19 = vector.load %arg10[%c0_22, %c1] : memref<4x16xf32, #tpu.memory_space<vmem>>, vector<4x1xf32>
    tpu.vector_store %arg10[%c0_22, %c1], %18 {strides = array<i32>} : memref<4x16xf32, #tpu.memory_space<vmem>>, vector<4x1xf32>,
    %c0_23 = arith.constant 0 : index
    %c0_24 = arith.constant 0 : index
    %c32 = arith.constant 32 : index
    %20 = vector.load %arg1[%c0_23, %c0_24, %c32] : memref<1x4x256xf32, #tpu.memory_space<vmem>>, vector<1x4x16xf32>
    %21 = vector.shape_cast %20 : vector<1x4x16xf32> to vector<4x16xf32>
    %22 = arith.addf %16, %21 : vector<4x16xf32>
    %cst_25 = arith.constant dense<0.000000e+00> : vector<4xf32>
    %23 = vector.multi_reduction <add>, %21, %cst_25 [1] : vector<4x16xf32> to vector<4xf32>
    %24 = vector.shape_cast %23 : vector<4xf32> to vector<4x1xf32>
    %c0_26 = arith.constant 0 : index
    %c2 = arith.constant 2 : index
    %25 = vector.load %arg10[%c0_26, %c2] : memref<4x16xf32, #tpu.memory_space<vmem>>, vector<4x1xf32>
    tpu.vector_store %arg10[%c0_26, %c2], %24 {strides = array<i32>} : memref<4x16xf32, #tpu.memory_space<vmem>>, vector<4x1xf32>,
    %c0_27 = arith.constant 0 : index
    %c0_28 = arith.constant 0 : index
    %c48 = arith.constant 48 : index
    %26 = vector.load %arg1[%c0_27, %c0_28, %c48] : memref<1x4x256xf32, #tpu.memory_space<vmem>>, vector<1x4x16xf32>
    %27 = vector.shape_cast %26 : vector<1x4x16xf32> to vector<4x16xf32>
    %28 = arith.addf %22, %27 : vector<4x16xf32>
    %cst_29 = arith.constant dense<0.000000e+00> : vector<4xf32>
    %29 = vector.multi_reduction <add>, %27, %cst_29 [1] : vector<4x16xf32> to vector<4xf32>
    %30 = vector.shape_cast %29 : vector<4xf32> to vector<4x1xf32>
    %c0_30 = arith.constant 0 : index
    %c3 = arith.constant 3 : index
    %31 = vector.load %arg10[%c0_30, %c3] : memref<4x16xf32, #tpu.memory_space<vmem>>, vector<4x1xf32>
    tpu.vector_store %arg10[%c0_30, %c3], %30 {strides = array<i32>} : memref<4x16xf32, #tpu.memory_space<vmem>>, vector<4x1xf32>,
    %c0_31 = arith.constant 0 : index
    %c0_32 = arith.constant 0 : index
    %c64 = arith.constant 64 : index
    %32 = vector.load %arg1[%c0_31, %c0_32, %c64] : memref<1x4x256xf32, #tpu.memory_space<vmem>>, vector<1x4x16xf32>
    %33 = vector.shape_cast %32 : vector<1x4x16xf32> to vector<4x16xf32>
    %34 = arith.addf %28, %33 : vector<4x16xf32>
    %cst_33 = arith.constant dense<0.000000e+00> : vector<4xf32>
    %35 = vector.multi_reduction <add>, %33, %cst_33 [1] : vector<4x16xf32> to vector<4xf32>
    %36 = vector.shape_cast %35 : vector<4xf32> to vector<4x1xf32>
    %c0_34 = arith.constant 0 : index
    %c4 = arith.constant 4 : index
    %37 = vector.load %arg10[%c0_34, %c4] : memref<4x16xf32, #tpu.memory_space<vmem>>, vector<4x1xf32>
    tpu.vector_store %arg10[%c0_34, %c4], %36 {strides = array<i32>} : memref<4x16xf32, #tpu.memory_space<vmem>>, vector<4x1xf32>,
    %c0_35 = arith.constant 0 : index
    %c0_36 = arith.constant 0 : index
    %c80 = arith.constant 80 : index
    %38 = vector.load %arg1[%c0_35, %c0_36, %c80] : memref<1x4x256xf32, #tpu.memory_space<vmem>>, vector<1x4x16xf32>
    %39 = vector.shape_cast %38 : vector<1x4x16xf32> to vector<4x16xf32>
    %40 = arith.addf %34, %39 : vector<4x16xf32>
    %cst_37 = arith.constant dense<0.000000e+00> : vector<4xf32>
    %41 = vector.multi_reduction <add>, %39, %cst_37 [1] : vector<4x16xf32> to vector<4xf32>
    %42 = vector.shape_cast %41 : vector<4xf32> to vector<4x1xf32>
    %c0_38 = arith.constant 0 : index
    %c5 = arith.constant 5 : index
    %43 = vector.load %arg10[%c0_38, %c5] : memref<4x16xf32, #tpu.memory_space<vmem>>, vector<4x1xf32>
    tpu.vector_store %arg10[%c0_38, %c5], %42 {strides = array<i32>} : memref<4x16xf32, #tpu.memory_space<vmem>>, vector<4x1xf32>,
    %c0_39 = arith.constant 0 : index
    %c0_40 = arith.constant 0 : index
    %c96 = arith.constant 96 : index
    %44 = vector.load %arg1[%c0_39, %c0_40, %c96] : memref<1x4x256xf32, #tpu.memory_space<vmem>>, vector<1x4x16xf32>
    %45 = vector.shape_cast %44 : vector<1x4x16xf32> to vector<4x16xf32>
    %46 = arith.addf %40, %45 : vector<4x16xf32>
    %cst_41 = arith.constant dense<0.000000e+00> : vector<4xf32>
    %47 = vector.multi_reduction <add>, %45, %cst_41 [1] : vector<4x16xf32> to vector<4xf32>
    %48 = vector.shape_cast %47 : vector<4xf32> to vector<4x1xf32>
    %c0_42 = arith.constant 0 : index
    %c6 = arith.constant 6 : index
    %49 = vector.load %arg10[%c0_42, %c6] : memref<4x16xf32, #tpu.memory_space<vmem>>, vector<4x1xf32>
    tpu.vector_store %arg10[%c0_42, %c6], %48 {strides = array<i32>} : memref<4x16xf32, #tpu.memory_space<vmem>>, vector<4x1xf32>,
    %c0_43 = arith.constant 0 : index
    %c0_44 = arith.constant 0 : index
    %c112 = arith.constant 112 : index
    %50 = vector.load %arg1[%c0_43, %c0_44, %c112] : memref<1x4x256xf32, #tpu.memory_space<vmem>>, vector<1x4x16xf32>
    %51 = vector.shape_cast %50 : vector<1x4x16xf32> to vector<4x16xf32>
    %52 = arith.addf %46, %51 : vector<4x16xf32>
    %cst_45 = arith.constant dense<0.000000e+00> : vector<4xf32>
    %53 = vector.multi_reduction <add>, %51, %cst_45 [1] : vector<4x16xf32> to vector<4xf32>
    %54 = vector.shape_cast %53 : vector<4xf32> to vector<4x1xf32>
    %c0_46 = arith.constant 0 : index
    %c7 = arith.constant 7 : index
    %55 = vector.load %arg10[%c0_46, %c7] : memref<4x16xf32, #tpu.memory_space<vmem>>, vector<4x1xf32>
    tpu.vector_store %arg10[%c0_46, %c7], %54 {strides = array<i32>} : memref<4x16xf32, #tpu.memory_space<vmem>>, vector<4x1xf32>,
    %c0_47 = arith.constant 0 : index
    %c0_48 = arith.constant 0 : index
    %c128 = arith.constant 128 : index
    %56 = vector.load %arg1[%c0_47, %c0_48, %c128] : memref<1x4x256xf32, #tpu.memory_space<vmem>>, vector<1x4x16xf32>
    %57 = vector.shape_cast %56 : vector<1x4x16xf32> to vector<4x16xf32>
    %58 = arith.addf %52, %57 : vector<4x16xf32>
    %cst_49 = arith.constant dense<0.000000e+00> : vector<4xf32>
    %59 = vector.multi_reduction <add>, %57, %cst_49 [1] : vector<4x16xf32> to vector<4xf32>
    %60 = vector.shape_cast %59 : vector<4xf32> to vector<4x1xf32>
    %c0_50 = arith.constant 0 : index
    %c8 = arith.constant 8 : index
    %61 = vector.load %arg10[%c0_50, %c8] : memref<4x16xf32, #tpu.memory_space<vmem>>, vector<4x1xf32>
    tpu.vector_store %arg10[%c0_50, %c8], %60 {strides = array<i32>} : memref<4x16xf32, #tpu.memory_space<vmem>>, vector<4x1xf32>,
    %c0_51 = arith.constant 0 : index
    %c0_52 = arith.constant 0 : index
    %c144 = arith.constant 144 : index
    %62 = vector.load %arg1[%c0_51, %c0_52, %c144] : memref<1x4x256xf32, #tpu.memory_space<vmem>>, vector<1x4x16xf32>
    %63 = vector.shape_cast %62 : vector<1x4x16xf32> to vector<4x16xf32>
    %64 = arith.addf %58, %63 : vector<4x16xf32>
    %cst_53 = arith.constant dense<0.000000e+00> : vector<4xf32>
    %65 = vector.multi_reduction <add>, %63, %cst_53 [1] : vector<4x16xf32> to vector<4xf32>
    %66 = vector.shape_cast %65 : vector<4xf32> to vector<4x1xf32>
    %c0_54 = arith.constant 0 : index
    %c9 = arith.constant 9 : index
    %67 = vector.load %arg10[%c0_54, %c9] : memref<4x16xf32, #tpu.memory_space<vmem>>, vector<4x1xf32>
    tpu.vector_store %arg10[%c0_54, %c9], %66 {strides = array<i32>} : memref<4x16xf32, #tpu.memory_space<vmem>>, vector<4x1xf32>,
    %c0_55 = arith.constant 0 : index
    %c0_56 = arith.constant 0 : index
    %c160 = arith.constant 160 : index
    %68 = vector.load %arg1[%c0_55, %c0_56, %c160] : memref<1x4x256xf32, #tpu.memory_space<vmem>>, vector<1x4x16xf32>
    %69 = vector.shape_cast %68 : vector<1x4x16xf32> to vector<4x16xf32>
    %70 = arith.addf %64, %69 : vector<4x16xf32>
    %cst_57 = arith.constant dense<0.000000e+00> : vector<4xf32>
    %71 = vector.multi_reduction <add>, %69, %cst_57 [1] : vector<4x16xf32> to vector<4xf32>
    %72 = vector.shape_cast %71 : vector<4xf32> to vector<4x1xf32>
    %c0_58 = arith.constant 0 : index
    %c10 = arith.constant 10 : index
    %73 = vector.load %arg10[%c0_58, %c10] : memref<4x16xf32, #tpu.memory_space<vmem>>, vector<4x1xf32>
    tpu.vector_store %arg10[%c0_58, %c10], %72 {strides = array<i32>} : memref<4x16xf32, #tpu.memory_space<vmem>>, vector<4x1xf32>,
    %c0_59 = arith.constant 0 : index
    %c0_60 = arith.constant 0 : index
    %c176 = arith.constant 176 : index
    %74 = vector.load %arg1[%c0_59, %c0_60, %c176] : memref<1x4x256xf32, #tpu.memory_space<vmem>>, vector<1x4x16xf32>
    %75 = vector.shape_cast %74 : vector<1x4x16xf32> to vector<4x16xf32>
    %76 = arith.addf %70, %75 : vector<4x16xf32>
    %cst_61 = arith.constant dense<0.000000e+00> : vector<4xf32>
    %77 = vector.multi_reduction <add>, %75, %cst_61 [1] : vector<4x16xf32> to vector<4xf32>
    %78 = vector.shape_cast %77 : vector<4xf32> to vector<4x1xf32>
    %c0_62 = arith.constant 0 : index
    %c11 = arith.constant 11 : index
    %79 = vector.load %arg10[%c0_62, %c11] : memref<4x16xf32, #tpu.memory_space<vmem>>, vector<4x1xf32>
    tpu.vector_store %arg10[%c0_62, %c11], %78 {strides = array<i32>} : memref<4x16xf32, #tpu.memory_space<vmem>>, vector<4x1xf32>,
    %c0_63 = arith.constant 0 : index
    %c0_64 = arith.constant 0 : index
    %c192 = arith.constant 192 : index
    %80 = vector.load %arg1[%c0_63, %c0_64, %c192] : memref<1x4x256xf32, #tpu.memory_space<vmem>>, vector<1x4x16xf32>
    %81 = vector.shape_cast %80 : vector<1x4x16xf32> to vector<4x16xf32>
    %82 = arith.addf %76, %81 : vector<4x16xf32>
    %cst_65 = arith.constant dense<0.000000e+00> : vector<4xf32>
    %83 = vector.multi_reduction <add>, %81, %cst_65 [1] : vector<4x16xf32> to vector<4xf32>
    %84 = vector.shape_cast %83 : vector<4xf32> to vector<4x1xf32>
    %c0_66 = arith.constant 0 : index
    %c12 = arith.constant 12 : index
    %85 = vector.load %arg10[%c0_66, %c12] : memref<4x16xf32, #tpu.memory_space<vmem>>, vector<4x1xf32>
    tpu.vector_store %arg10[%c0_66, %c12], %84 {strides = array<i32>} : memref<4x16xf32, #tpu.memory_space<vmem>>, vector<4x1xf32>,
    %c0_67 = arith.constant 0 : index
    %c0_68 = arith.constant 0 : index
    %c208 = arith.constant 208 : index
    %86 = vector.load %arg1[%c0_67, %c0_68, %c208] : memref<1x4x256xf32, #tpu.memory_space<vmem>>, vector<1x4x16xf32>
    %87 = vector.shape_cast %86 : vector<1x4x16xf32> to vector<4x16xf32>
    %88 = arith.addf %82, %87 : vector<4x16xf32>
    %cst_69 = arith.constant dense<0.000000e+00> : vector<4xf32>
    %89 = vector.multi_reduction <add>, %87, %cst_69 [1] : vector<4x16xf32> to vector<4xf32>
    %90 = vector.shape_cast %89 : vector<4xf32> to vector<4x1xf32>
    %c0_70 = arith.constant 0 : index
    %c13 = arith.constant 13 : index
    %91 = vector.load %arg10[%c0_70, %c13] : memref<4x16xf32, #tpu.memory_space<vmem>>, vector<4x1xf32>
    tpu.vector_store %arg10[%c0_70, %c13], %90 {strides = array<i32>} : memref<4x16xf32, #tpu.memory_space<vmem>>, vector<4x1xf32>,
    %c0_71 = arith.constant 0 : index
    %c0_72 = arith.constant 0 : index
    %c224 = arith.constant 224 : index
    %92 = vector.load %arg1[%c0_71, %c0_72, %c224] : memref<1x4x256xf32, #tpu.memory_space<vmem>>, vector<1x4x16xf32>
    %93 = vector.shape_cast %92 : vector<1x4x16xf32> to vector<4x16xf32>
    %94 = arith.addf %88, %93 : vector<4x16xf32>
    %cst_73 = arith.constant dense<0.000000e+00> : vector<4xf32>
    %95 = vector.multi_reduction <add>, %93, %cst_73 [1] : vector<4x16xf32> to vector<4xf32>
    %96 = vector.shape_cast %95 : vector<4xf32> to vector<4x1xf32>
    %c0_74 = arith.constant 0 : index
    %c14 = arith.constant 14 : index
    %97 = vector.load %arg10[%c0_74, %c14] : memref<4x16xf32, #tpu.memory_space<vmem>>, vector<4x1xf32>
    tpu.vector_store %arg10[%c0_74, %c14], %96 {strides = array<i32>} : memref<4x16xf32, #tpu.memory_space<vmem>>, vector<4x1xf32>,
    %c0_75 = arith.constant 0 : index
    %c0_76 = arith.constant 0 : index
    %c240 = arith.constant 240 : index
    %98 = vector.load %arg1[%c0_75, %c0_76, %c240] : memref<1x4x256xf32, #tpu.memory_space<vmem>>, vector<1x4x16xf32>
    %99 = vector.shape_cast %98 : vector<1x4x16xf32> to vector<4x16xf32>
    %100 = arith.addf %94, %99 : vector<4x16xf32>
    %cst_77 = arith.constant dense<0.000000e+00> : vector<4xf32>
    %101 = vector.multi_reduction <add>, %99, %cst_77 [1] : vector<4x16xf32> to vector<4xf32>
    %102 = vector.shape_cast %101 : vector<4xf32> to vector<4x1xf32>
    %c0_78 = arith.constant 0 : index
    %c15 = arith.constant 15 : index
    %103 = vector.load %arg10[%c0_78, %c15] : memref<4x16xf32, #tpu.memory_space<vmem>>, vector<4x1xf32>
    tpu.vector_store %arg10[%c0_78, %c15], %102 {strides = array<i32>} : memref<4x16xf32, #tpu.memory_space<vmem>>, vector<4x1xf32>,
    %c0_79 = arith.constant 0 : index
    %c0_80 = arith.constant 0 : index
    %104 = vector.load %arg10[%c0_79, %c0_80] : memref<4x16xf32, #tpu.memory_space<vmem>>, vector<4x16xf32>
    %cst_81 = arith.constant 6.250000e-02 : f32
    %105 = vector.broadcast %cst_81 : f32 to vector<4x16xf32>
    %106 = arith.mulf %104, %105 : vector<4x16xf32>
    %cst_82 = arith.constant 6.250000e-02 : f32
    %107 = vector.broadcast %cst_82 : f32 to vector<4x16xf32>
    %108 = arith.mulf %100, %107 : vector<4x16xf32>
    %109 = vector.extract_strided_slice %0 {offsets = [0, 0], sizes = [8, 1], strides = [1, 1]} : vector<8x4xf32> to vector<8x1xf32>
    %110 = vector.extract_strided_slice %106 {offsets = [0, 0], sizes = [1, 16], strides = [1, 1]} : vector<4x16xf32> to vector<1x16xf32>
    %111 = vector.broadcast %109 : vector<8x1xf32> to vector<8x16xf32>
    %112 = vector.broadcast %110 : vector<1x16xf32> to vector<8x16xf32>
    %113 = arith.mulf %111, %112 : vector<8x16xf32>
    %114 = vector.extract_strided_slice %0 {offsets = [0, 1], sizes = [8, 1], strides = [1, 1]} : vector<8x4xf32> to vector<8x1xf32>
    %115 = vector.extract_strided_slice %106 {offsets = [1, 0], sizes = [1, 16], strides = [1, 1]} : vector<4x16xf32> to vector<1x16xf32>
    %116 = vector.broadcast %114 : vector<8x1xf32> to vector<8x16xf32>
    %117 = vector.broadcast %115 : vector<1x16xf32> to vector<8x16xf32>
    %118 = arith.mulf %116, %117 : vector<8x16xf32>
    %119 = arith.addf %113, %118 : vector<8x16xf32>
    %120 = vector.extract_strided_slice %0 {offsets = [0, 2], sizes = [8, 1], strides = [1, 1]} : vector<8x4xf32> to vector<8x1xf32>
    %121 = vector.extract_strided_slice %106 {offsets = [2, 0], sizes = [1, 16], strides = [1, 1]} : vector<4x16xf32> to vector<1x16xf32>
    %122 = vector.broadcast %120 : vector<8x1xf32> to vector<8x16xf32>
    %123 = vector.broadcast %121 : vector<1x16xf32> to vector<8x16xf32>
    %124 = arith.mulf %122, %123 : vector<8x16xf32>
    %125 = arith.addf %119, %124 : vector<8x16xf32>
    %126 = vector.extract_strided_slice %0 {offsets = [0, 3], sizes = [8, 1], strides = [1, 1]} : vector<8x4xf32> to vector<8x1xf32>
    %127 = vector.extract_strided_slice %106 {offsets = [3, 0], sizes = [1, 16], strides = [1, 1]} : vector<4x16xf32> to vector<1x16xf32>
    %128 = vector.broadcast %126 : vector<8x1xf32> to vector<8x16xf32>
    %129 = vector.broadcast %127 : vector<1x16xf32> to vector<8x16xf32>
    %130 = arith.mulf %128, %129 : vector<8x16xf32>
    %131 = arith.addf %125, %130 : vector<8x16xf32>
    %132 = vector.broadcast %1 : vector<8x1xf32> to vector<8x16xf32>
    %133 = arith.mulf %131, %132 : vector<8x16xf32>
    %134 = vector.broadcast %2 : vector<8x1xf32> to vector<8x16xf32>
    %135 = arith.addf %133, %134 : vector<8x16xf32>
    %cst_83 = arith.constant 3.000000e+00 : f32
    %136 = vector.broadcast %cst_83 : f32 to vector<8x16xf32>
    %137 = arith.addf %135, %136 : vector<8x16xf32>
    %cst_84 = arith.constant 0.000000e+00 : f32
    %cst_85 = arith.constant 6.000000e+00 : f32
    %138 = vector.broadcast %cst_84 : f32 to vector<8x16xf32>
    %139 = arith.maximumf %138, %137 : vector<8x16xf32>
    %140 = vector.broadcast %cst_85 : f32 to vector<8x16xf32>
    %141 = arith.minimumf %140, %139 : vector<8x16xf32>
    %cst_86 = arith.constant 0.166666672 : f32
    %142 = vector.broadcast %cst_86 : f32 to vector<8x16xf32>
    %143 = arith.mulf %141, %142 : vector<8x16xf32>
    %144 = arith.mulf %135, %143 : vector<8x16xf32>
    %145 = vector.extract_strided_slice %0 {offsets = [0, 0], sizes = [8, 1], strides = [1, 1]} : vector<8x4xf32> to vector<8x1xf32>
    %146 = vector.extract_strided_slice %108 {offsets = [0, 0], sizes = [1, 16], strides = [1, 1]} : vector<4x16xf32> to vector<1x16xf32>
    %147 = vector.broadcast %145 : vector<8x1xf32> to vector<8x16xf32>
    %148 = vector.broadcast %146 : vector<1x16xf32> to vector<8x16xf32>
    %149 = arith.mulf %147, %148 : vector<8x16xf32>
    %150 = vector.extract_strided_slice %0 {offsets = [0, 1], sizes = [8, 1], strides = [1, 1]} : vector<8x4xf32> to vector<8x1xf32>
    %151 = vector.extract_strided_slice %108 {offsets = [1, 0], sizes = [1, 16], strides = [1, 1]} : vector<4x16xf32> to vector<1x16xf32>
    %152 = vector.broadcast %150 : vector<8x1xf32> to vector<8x16xf32>
    %153 = vector.broadcast %151 : vector<1x16xf32> to vector<8x16xf32>
    %154 = arith.mulf %152, %153 : vector<8x16xf32>
    %155 = arith.addf %149, %154 : vector<8x16xf32>
    %156 = vector.extract_strided_slice %0 {offsets = [0, 2], sizes = [8, 1], strides = [1, 1]} : vector<8x4xf32> to vector<8x1xf32>
    %157 = vector.extract_strided_slice %108 {offsets = [2, 0], sizes = [1, 16], strides = [1, 1]} : vector<4x16xf32> to vector<1x16xf32>
    %158 = vector.broadcast %156 : vector<8x1xf32> to vector<8x16xf32>
    %159 = vector.broadcast %157 : vector<1x16xf32> to vector<8x16xf32>
    %160 = arith.mulf %158, %159 : vector<8x16xf32>
    %161 = arith.addf %155, %160 : vector<8x16xf32>
    %162 = vector.extract_strided_slice %0 {offsets = [0, 3], sizes = [8, 1], strides = [1, 1]} : vector<8x4xf32> to vector<8x1xf32>
    %163 = vector.extract_strided_slice %108 {offsets = [3, 0], sizes = [1, 16], strides = [1, 1]} : vector<4x16xf32> to vector<1x16xf32>
    %164 = vector.broadcast %162 : vector<8x1xf32> to vector<8x16xf32>
    %165 = vector.broadcast %163 : vector<1x16xf32> to vector<8x16xf32>
    %166 = arith.mulf %164, %165 : vector<8x16xf32>
    %167 = arith.addf %161, %166 : vector<8x16xf32>
    %168 = vector.broadcast %1 : vector<8x1xf32> to vector<8x16xf32>
    %169 = arith.mulf %167, %168 : vector<8x16xf32>
    %170 = vector.broadcast %2 : vector<8x1xf32> to vector<8x16xf32>
    %171 = arith.addf %169, %170 : vector<8x16xf32>
    %cst_87 = arith.constant 3.000000e+00 : f32
    %172 = vector.broadcast %cst_87 : f32 to vector<8x16xf32>
    %173 = arith.addf %171, %172 : vector<8x16xf32>
    %cst_88 = arith.constant 0.000000e+00 : f32
    %cst_89 = arith.constant 6.000000e+00 : f32
    %174 = vector.broadcast %cst_88 : f32 to vector<8x16xf32>
    %175 = arith.maximumf %174, %173 : vector<8x16xf32>
    %176 = vector.broadcast %cst_89 : f32 to vector<8x16xf32>
    %177 = arith.minimumf %176, %175 : vector<8x16xf32>
    %cst_90 = arith.constant 0.166666672 : f32
    %178 = vector.broadcast %cst_90 : f32 to vector<8x16xf32>
    %179 = arith.mulf %177, %178 : vector<8x16xf32>
    %180 = arith.mulf %171, %179 : vector<8x16xf32>
    %181 = vector.extract_strided_slice %3 {offsets = [0, 0], sizes = [4, 1], strides = [1, 1]} : vector<4x8xf32> to vector<4x1xf32>
    %182 = vector.extract_strided_slice %144 {offsets = [0, 0], sizes = [1, 16], strides = [1, 1]} : vector<8x16xf32> to vector<1x16xf32>
    %183 = vector.broadcast %181 : vector<4x1xf32> to vector<4x16xf32>
    %184 = vector.broadcast %182 : vector<1x16xf32> to vector<4x16xf32>
    %185 = arith.mulf %183, %184 : vector<4x16xf32>
    %186 = vector.extract_strided_slice %3 {offsets = [0, 1], sizes = [4, 1], strides = [1, 1]} : vector<4x8xf32> to vector<4x1xf32>
    %187 = vector.extract_strided_slice %144 {offsets = [1, 0], sizes = [1, 16], strides = [1, 1]} : vector<8x16xf32> to vector<1x16xf32>
    %188 = vector.broadcast %186 : vector<4x1xf32> to vector<4x16xf32>
    %189 = vector.broadcast %187 : vector<1x16xf32> to vector<4x16xf32>
    %190 = arith.mulf %188, %189 : vector<4x16xf32>
    %191 = arith.addf %185, %190 : vector<4x16xf32>
    %192 = vector.extract_strided_slice %3 {offsets = [0, 2], sizes = [4, 1], strides = [1, 1]} : vector<4x8xf32> to vector<4x1xf32>
    %193 = vector.extract_strided_slice %144 {offsets = [2, 0], sizes = [1, 16], strides = [1, 1]} : vector<8x16xf32> to vector<1x16xf32>
    %194 = vector.broadcast %192 : vector<4x1xf32> to vector<4x16xf32>
    %195 = vector.broadcast %193 : vector<1x16xf32> to vector<4x16xf32>
    %196 = arith.mulf %194, %195 : vector<4x16xf32>
    %197 = arith.addf %191, %196 : vector<4x16xf32>
    %198 = vector.extract_strided_slice %3 {offsets = [0, 3], sizes = [4, 1], strides = [1, 1]} : vector<4x8xf32> to vector<4x1xf32>
    %199 = vector.extract_strided_slice %144 {offsets = [3, 0], sizes = [1, 16], strides = [1, 1]} : vector<8x16xf32> to vector<1x16xf32>
    %200 = vector.broadcast %198 : vector<4x1xf32> to vector<4x16xf32>
    %201 = vector.broadcast %199 : vector<1x16xf32> to vector<4x16xf32>
    %202 = arith.mulf %200, %201 : vector<4x16xf32>
    %203 = arith.addf %197, %202 : vector<4x16xf32>
    %204 = vector.extract_strided_slice %3 {offsets = [0, 4], sizes = [4, 1], strides = [1, 1]} : vector<4x8xf32> to vector<4x1xf32>
    %205 = vector.extract_strided_slice %144 {offsets = [4, 0], sizes = [1, 16], strides = [1, 1]} : vector<8x16xf32> to vector<1x16xf32>
    %206 = vector.broadcast %204 : vector<4x1xf32> to vector<4x16xf32>
    %207 = vector.broadcast %205 : vector<1x16xf32> to vector<4x16xf32>
    %208 = arith.mulf %206, %207 : vector<4x16xf32>
    %209 = arith.addf %203, %208 : vector<4x16xf32>
    %210 = vector.extract_strided_slice %3 {offsets = [0, 5], sizes = [4, 1], strides = [1, 1]} : vector<4x8xf32> to vector<4x1xf32>
    %211 = vector.extract_strided_slice %144 {offsets = [5, 0], sizes = [1, 16], strides = [1, 1]} : vector<8x16xf32> to vector<1x16xf32>
    %212 = vector.broadcast %210 : vector<4x1xf32> to vector<4x16xf32>
    %213 = vector.broadcast %211 : vector<1x16xf32> to vector<4x16xf32>
    %214 = arith.mulf %212, %213 : vector<4x16xf32>
    %215 = arith.addf %209, %214 : vector<4x16xf32>
    %216 = vector.extract_strided_slice %3 {offsets = [0, 6], sizes = [4, 1], strides = [1, 1]} : vector<4x8xf32> to vector<4x1xf32>
    %217 = vector.extract_strided_slice %144 {offsets = [6, 0], sizes = [1, 16], strides = [1, 1]} : vector<8x16xf32> to vector<1x16xf32>
    %218 = vector.broadcast %216 : vector<4x1xf32> to vector<4x16xf32>
    %219 = vector.broadcast %217 : vector<1x16xf32> to vector<4x16xf32>
    %220 = arith.mulf %218, %219 : vector<4x16xf32>
    %221 = arith.addf %215, %220 : vector<4x16xf32>
    %222 = vector.extract_strided_slice %3 {offsets = [0, 7], sizes = [4, 1], strides = [1, 1]} : vector<4x8xf32> to vector<4x1xf32>
    %223 = vector.extract_strided_slice %144 {offsets = [7, 0], sizes = [1, 16], strides = [1, 1]} : vector<8x16xf32> to vector<1x16xf32>
    %224 = vector.broadcast %222 : vector<4x1xf32> to vector<4x16xf32>
    %225 = vector.broadcast %223 : vector<1x16xf32> to vector<4x16xf32>
    %226 = arith.mulf %224, %225 : vector<4x16xf32>
    %227 = arith.addf %221, %226 : vector<4x16xf32>
    %228 = vector.broadcast %4 : vector<4x1xf32> to vector<4x16xf32>
    %229 = arith.addf %227, %228 : vector<4x16xf32>
    %cst_91 = arith.constant 0.000000e+00 : f32
    %230 = vector.broadcast %cst_91 : f32 to vector<4x16xf32>
    %231 = arith.subf %230, %229 : vector<4x16xf32>
    %232 = math.exp %231 : vector<4x16xf32>
    %cst_92 = arith.constant 1.000000e+00 : f32
    %233 = vector.broadcast %cst_92 : f32 to vector<4x16xf32>
    %234 = arith.addf %233, %232 : vector<4x16xf32>
    %cst_93 = arith.constant 1.000000e+00 : f32
    %235 = vector.broadcast %cst_93 : f32 to vector<4x16xf32>
    %236 = arith.divf %235, %234 : vector<4x16xf32>
    %c0_94 = arith.constant 0 : index
    %c0_95 = arith.constant 0 : index
    %237 = vector.load %arg11[%c0_94, %c0_95] : memref<4x16xf32, #tpu.memory_space<vmem>>, vector<4x16xf32>
    tpu.vector_store %arg11[%c0_94, %c0_95], %236 {strides = array<i32>} : memref<4x16xf32, #tpu.memory_space<vmem>>, vector<4x16xf32>,
    %238 = vector.extract_strided_slice %5 {offsets = [0, 0], sizes = [4, 1], strides = [1, 1]} : vector<4x8xf32> to vector<4x1xf32>
    %239 = vector.extract_strided_slice %180 {offsets = [0, 0], sizes = [1, 16], strides = [1, 1]} : vector<8x16xf32> to vector<1x16xf32>
    %240 = vector.broadcast %238 : vector<4x1xf32> to vector<4x16xf32>
    %241 = vector.broadcast %239 : vector<1x16xf32> to vector<4x16xf32>
    %242 = arith.mulf %240, %241 : vector<4x16xf32>
    %243 = vector.extract_strided_slice %5 {offsets = [0, 1], sizes = [4, 1], strides = [1, 1]} : vector<4x8xf32> to vector<4x1xf32>
    %244 = vector.extract_strided_slice %180 {offsets = [1, 0], sizes = [1, 16], strides = [1, 1]} : vector<8x16xf32> to vector<1x16xf32>
    %245 = vector.broadcast %243 : vector<4x1xf32> to vector<4x16xf32>
    %246 = vector.broadcast %244 : vector<1x16xf32> to vector<4x16xf32>
    %247 = arith.mulf %245, %246 : vector<4x16xf32>
    %248 = arith.addf %242, %247 : vector<4x16xf32>
    %249 = vector.extract_strided_slice %5 {offsets = [0, 2], sizes = [4, 1], strides = [1, 1]} : vector<4x8xf32> to vector<4x1xf32>
    %250 = vector.extract_strided_slice %180 {offsets = [2, 0], sizes = [1, 16], strides = [1, 1]} : vector<8x16xf32> to vector<1x16xf32>
    %251 = vector.broadcast %249 : vector<4x1xf32> to vector<4x16xf32>
    %252 = vector.broadcast %250 : vector<1x16xf32> to vector<4x16xf32>
    %253 = arith.mulf %251, %252 : vector<4x16xf32>
    %254 = arith.addf %248, %253 : vector<4x16xf32>
    %255 = vector.extract_strided_slice %5 {offsets = [0, 3], sizes = [4, 1], strides = [1, 1]} : vector<4x8xf32> to vector<4x1xf32>
    %256 = vector.extract_strided_slice %180 {offsets = [3, 0], sizes = [1, 16], strides = [1, 1]} : vector<8x16xf32> to vector<1x16xf32>
    %257 = vector.broadcast %255 : vector<4x1xf32> to vector<4x16xf32>
    %258 = vector.broadcast %256 : vector<1x16xf32> to vector<4x16xf32>
    %259 = arith.mulf %257, %258 : vector<4x16xf32>
    %260 = arith.addf %254, %259 : vector<4x16xf32>
    %261 = vector.extract_strided_slice %5 {offsets = [0, 4], sizes = [4, 1], strides = [1, 1]} : vector<4x8xf32> to vector<4x1xf32>
    %262 = vector.extract_strided_slice %180 {offsets = [4, 0], sizes = [1, 16], strides = [1, 1]} : vector<8x16xf32> to vector<1x16xf32>
    %263 = vector.broadcast %261 : vector<4x1xf32> to vector<4x16xf32>
    %264 = vector.broadcast %262 : vector<1x16xf32> to vector<4x16xf32>
    %265 = arith.mulf %263, %264 : vector<4x16xf32>
    %266 = arith.addf %260, %265 : vector<4x16xf32>
    %267 = vector.extract_strided_slice %5 {offsets = [0, 5], sizes = [4, 1], strides = [1, 1]} : vector<4x8xf32> to vector<4x1xf32>
    %268 = vector.extract_strided_slice %180 {offsets = [5, 0], sizes = [1, 16], strides = [1, 1]} : vector<8x16xf32> to vector<1x16xf32>
    %269 = vector.broadcast %267 : vector<4x1xf32> to vector<4x16xf32>
    %270 = vector.broadcast %268 : vector<1x16xf32> to vector<4x16xf32>
    %271 = arith.mulf %269, %270 : vector<4x16xf32>
    %272 = arith.addf %266, %271 : vector<4x16xf32>
    %273 = vector.extract_strided_slice %5 {offsets = [0, 6], sizes = [4, 1], strides = [1, 1]} : vector<4x8xf32> to vector<4x1xf32>
    %274 = vector.extract_strided_slice %180 {offsets = [6, 0], sizes = [1, 16], strides = [1, 1]} : vector<8x16xf32> to vector<1x16xf32>
    %275 = vector.broadcast %273 : vector<4x1xf32> to vector<4x16xf32>
    %276 = vector.broadcast %274 : vector<1x16xf32> to vector<4x16xf32>
    %277 = arith.mulf %275, %276 : vector<4x16xf32>
    %278 = arith.addf %272, %277 : vector<4x16xf32>
    %279 = vector.extract_strided_slice %5 {offsets = [0, 7], sizes = [4, 1], strides = [1, 1]} : vector<4x8xf32> to vector<4x1xf32>
    %280 = vector.extract_strided_slice %180 {offsets = [7, 0], sizes = [1, 16], strides = [1, 1]} : vector<8x16xf32> to vector<1x16xf32>
    %281 = vector.broadcast %279 : vector<4x1xf32> to vector<4x16xf32>
    %282 = vector.broadcast %280 : vector<1x16xf32> to vector<4x16xf32>
    %283 = arith.mulf %281, %282 : vector<4x16xf32>
    %284 = arith.addf %278, %283 : vector<4x16xf32>
    %285 = vector.broadcast %6 : vector<4x1xf32> to vector<4x16xf32>
    %286 = arith.addf %284, %285 : vector<4x16xf32>
    %cst_96 = arith.constant 0.000000e+00 : f32
    %287 = vector.broadcast %cst_96 : f32 to vector<4x16xf32>
    %288 = arith.subf %287, %286 : vector<4x16xf32>
    %289 = math.exp %288 : vector<4x16xf32>
    %cst_97 = arith.constant 1.000000e+00 : f32
    %290 = vector.broadcast %cst_97 : f32 to vector<4x16xf32>
    %291 = arith.addf %290, %289 : vector<4x16xf32>
    %cst_98 = arith.constant 1.000000e+00 : f32
    %292 = vector.broadcast %cst_98 : f32 to vector<4x16xf32>
    %293 = arith.divf %292, %291 : vector<4x16xf32>
    %c0_i32 = arith.constant 0 : i32
    %c1_i32 = arith.constant 1 : i32
    %294 = arith.muli %c0_i32, %c1_i32 : i32
    %c0_i32_99 = arith.constant 0 : i32
    %295 = arith.addi %c0_i32_99, %294 : i32
    %c256_i32 = arith.constant 256 : i32
    %296 = arith.muli %295, %c256_i32 : i32
    %297 = tpu.assume_multiple %296, 256 : i32
    %c16_i32 = arith.constant 16 : i32
    %298 = arith.muli %295, %c16_i32 : i32
    %c0_i32_100 = arith.constant 0 : i32
    %299 = arith.addi %298, %c0_i32_100 : i32
    %c0_101 = arith.constant 0 : index
    %300 = arith.index_cast %299 : i32 to index
    %301 = vector.load %arg11[%c0_101, %300] : memref<4x16xf32, #tpu.memory_space<vmem>>, vector<4x1xf32>
    %302 = vector.broadcast %301 : vector<4x1xf32> to vector<4x16xf32>
    %303 = arith.mulf %302, %293 : vector<4x16xf32>
    %c0_102 = arith.constant 0 : index
    %c0_103 = arith.constant 0 : index
    %304 = vector.load %arg12[%c0_102, %c0_103] : memref<4x256xf32, #tpu.memory_space<vmem>>, vector<4x16xf32>
    tpu.vector_store %arg12[%c0_102, %c0_103], %303 {strides = array<i32>} : memref<4x256xf32, #tpu.memory_space<vmem>>, vector<4x16xf32>,
    %c16_i32_104 = arith.constant 16 : i32
    %305 = arith.muli %295, %c16_i32_104 : i32
    %c1_i32_105 = arith.constant 1 : i32
    %306 = arith.addi %305, %c1_i32_105 : i32
    %c0_106 = arith.constant 0 : index
    %307 = arith.index_cast %306 : i32 to index
    %308 = vector.load %arg11[%c0_106, %307] : memref<4x16xf32, #tpu.memory_space<vmem>>, vector<4x1xf32>
    %309 = vector.broadcast %308 : vector<4x1xf32> to vector<4x16xf32>
    %310 = arith.mulf %309, %293 : vector<4x16xf32>
    %c0_107 = arith.constant 0 : index
    %c16_108 = arith.constant 16 : index
    %311 = vector.load %arg12[%c0_107, %c16_108] : memref<4x256xf32, #tpu.memory_space<vmem>>, vector<4x16xf32>
    tpu.vector_store %arg12[%c0_107, %c16_108], %310 {strides = array<i32>} : memref<4x256xf32, #tpu.memory_space<vmem>>, vector<4x16xf32>,
    %c16_i32_109 = arith.constant 16 : i32
    %312 = arith.muli %295, %c16_i32_109 : i32
    %c2_i32 = arith.constant 2 : i32
    %313 = arith.addi %312, %c2_i32 : i32
    %c0_110 = arith.constant 0 : index
    %314 = arith.index_cast %313 : i32 to index
    %315 = vector.load %arg11[%c0_110, %314] : memref<4x16xf32, #tpu.memory_space<vmem>>, vector<4x1xf32>
    %316 = vector.broadcast %315 : vector<4x1xf32> to vector<4x16xf32>
    %317 = arith.mulf %316, %293 : vector<4x16xf32>
    %c0_111 = arith.constant 0 : index
    %c32_112 = arith.constant 32 : index
    %318 = vector.load %arg12[%c0_111, %c32_112] : memref<4x256xf32, #tpu.memory_space<vmem>>, vector<4x16xf32>
    tpu.vector_store %arg12[%c0_111, %c32_112], %317 {strides = array<i32>} : memref<4x256xf32, #tpu.memory_space<vmem>>, vector<4x16xf32>,
    %c16_i32_113 = arith.constant 16 : i32
    %319 = arith.muli %295, %c16_i32_113 : i32
    %c3_i32 = arith.constant 3 : i32
    %320 = arith.addi %319, %c3_i32 : i32
    %c0_114 = arith.constant 0 : index
    %321 = arith.index_cast %320 : i32 to index
    %322 = vector.load %arg11[%c0_114, %321] : memref<4x16xf32, #tpu.memory_space<vmem>>, vector<4x1xf32>
    %323 = vector.broadcast %322 : vector<4x1xf32> to vector<4x16xf32>
    %324 = arith.mulf %323, %293 : vector<4x16xf32>
    %c0_115 = arith.constant 0 : index
    %c48_116 = arith.constant 48 : index
    %325 = vector.load %arg12[%c0_115, %c48_116] : memref<4x256xf32, #tpu.memory_space<vmem>>, vector<4x16xf32>
    tpu.vector_store %arg12[%c0_115, %c48_116], %324 {strides = array<i32>} : memref<4x256xf32, #tpu.memory_space<vmem>>, vector<4x16xf32>,
    %c16_i32_117 = arith.constant 16 : i32
    %326 = arith.muli %295, %c16_i32_117 : i32
    %c4_i32 = arith.constant 4 : i32
    %327 = arith.addi %326, %c4_i32 : i32
    %c0_118 = arith.constant 0 : index
    %328 = arith.index_cast %327 : i32 to index
    %329 = vector.load %arg11[%c0_118, %328] : memref<4x16xf32, #tpu.memory_space<vmem>>, vector<4x1xf32>
    %330 = vector.broadcast %329 : vector<4x1xf32> to vector<4x16xf32>
    %331 = arith.mulf %330, %293 : vector<4x16xf32>
    %c0_119 = arith.constant 0 : index
    %c64_120 = arith.constant 64 : index
    %332 = vector.load %arg12[%c0_119, %c64_120] : memref<4x256xf32, #tpu.memory_space<vmem>>, vector<4x16xf32>
    tpu.vector_store %arg12[%c0_119, %c64_120], %331 {strides = array<i32>} : memref<4x256xf32, #tpu.memory_space<vmem>>, vector<4x16xf32>,
    %c16_i32_121 = arith.constant 16 : i32
    %333 = arith.muli %295, %c16_i32_121 : i32
    %c5_i32 = arith.constant 5 : i32
    %334 = arith.addi %333, %c5_i32 : i32
    %c0_122 = arith.constant 0 : index
    %335 = arith.index_cast %334 : i32 to index
    %336 = vector.load %arg11[%c0_122, %335] : memref<4x16xf32, #tpu.memory_space<vmem>>, vector<4x1xf32>
    %337 = vector.broadcast %336 : vector<4x1xf32> to vector<4x16xf32>
    %338 = arith.mulf %337, %293 : vector<4x16xf32>
    %c0_123 = arith.constant 0 : index
    %c80_124 = arith.constant 80 : index
    %339 = vector.load %arg12[%c0_123, %c80_124] : memref<4x256xf32, #tpu.memory_space<vmem>>, vector<4x16xf32>
    tpu.vector_store %arg12[%c0_123, %c80_124], %338 {strides = array<i32>} : memref<4x256xf32, #tpu.memory_space<vmem>>, vector<4x16xf32>,
    %c16_i32_125 = arith.constant 16 : i32
    %340 = arith.muli %295, %c16_i32_125 : i32
    %c6_i32 = arith.constant 6 : i32
    %341 = arith.addi %340, %c6_i32 : i32
    %c0_126 = arith.constant 0 : index
    %342 = arith.index_cast %341 : i32 to index
    %343 = vector.load %arg11[%c0_126, %342] : memref<4x16xf32, #tpu.memory_space<vmem>>, vector<4x1xf32>
    %344 = vector.broadcast %343 : vector<4x1xf32> to vector<4x16xf32>
    %345 = arith.mulf %344, %293 : vector<4x16xf32>
    %c0_127 = arith.constant 0 : index
    %c96_128 = arith.constant 96 : index
    %346 = vector.load %arg12[%c0_127, %c96_128] : memref<4x256xf32, #tpu.memory_space<vmem>>, vector<4x16xf32>
    tpu.vector_store %arg12[%c0_127, %c96_128], %345 {strides = array<i32>} : memref<4x256xf32, #tpu.memory_space<vmem>>, vector<4x16xf32>,
    %c16_i32_129 = arith.constant 16 : i32
    %347 = arith.muli %295, %c16_i32_129 : i32
    %c7_i32 = arith.constant 7 : i32
    %348 = arith.addi %347, %c7_i32 : i32
    %c0_130 = arith.constant 0 : index
    %349 = arith.index_cast %348 : i32 to index
    %350 = vector.load %arg11[%c0_130, %349] : memref<4x16xf32, #tpu.memory_space<vmem>>, vector<4x1xf32>
    %351 = vector.broadcast %350 : vector<4x1xf32> to vector<4x16xf32>
    %352 = arith.mulf %351, %293 : vector<4x16xf32>
    %c0_131 = arith.constant 0 : index
    %c112_132 = arith.constant 112 : index
    %353 = vector.load %arg12[%c0_131, %c112_132] : memref<4x256xf32, #tpu.memory_space<vmem>>, vector<4x16xf32>
    tpu.vector_store %arg12[%c0_131, %c112_132], %352 {strides = array<i32>} : memref<4x256xf32, #tpu.memory_space<vmem>>, vector<4x16xf32>,
    %c16_i32_133 = arith.constant 16 : i32
    %354 = arith.muli %295, %c16_i32_133 : i32
    %c8_i32 = arith.constant 8 : i32
    %355 = arith.addi %354, %c8_i32 : i32
    %c0_134 = arith.constant 0 : index
    %356 = arith.index_cast %355 : i32 to index
    %357 = vector.load %arg11[%c0_134, %356] : memref<4x16xf32, #tpu.memory_space<vmem>>, vector<4x1xf32>
    %358 = vector.broadcast %357 : vector<4x1xf32> to vector<4x16xf32>
    %359 = arith.mulf %358, %293 : vector<4x16xf32>
    %c0_135 = arith.constant 0 : index
    %c128_136 = arith.constant 128 : index
    %360 = vector.load %arg12[%c0_135, %c128_136] : memref<4x256xf32, #tpu.memory_space<vmem>>, vector<4x16xf32>
    tpu.vector_store %arg12[%c0_135, %c128_136], %359 {strides = array<i32>} : memref<4x256xf32, #tpu.memory_space<vmem>>, vector<4x16xf32>,
    %c16_i32_137 = arith.constant 16 : i32
    %361 = arith.muli %295, %c16_i32_137 : i32
    %c9_i32 = arith.constant 9 : i32
    %362 = arith.addi %361, %c9_i32 : i32
    %c0_138 = arith.constant 0 : index
    %363 = arith.index_cast %362 : i32 to index
    %364 = vector.load %arg11[%c0_138, %363] : memref<4x16xf32, #tpu.memory_space<vmem>>, vector<4x1xf32>
    %365 = vector.broadcast %364 : vector<4x1xf32> to vector<4x16xf32>
    %366 = arith.mulf %365, %293 : vector<4x16xf32>
    %c0_139 = arith.constant 0 : index
    %c144_140 = arith.constant 144 : index
    %367 = vector.load %arg12[%c0_139, %c144_140] : memref<4x256xf32, #tpu.memory_space<vmem>>, vector<4x16xf32>
    tpu.vector_store %arg12[%c0_139, %c144_140], %366 {strides = array<i32>} : memref<4x256xf32, #tpu.memory_space<vmem>>, vector<4x16xf32>,
    %c16_i32_141 = arith.constant 16 : i32
    %368 = arith.muli %295, %c16_i32_141 : i32
    %c10_i32 = arith.constant 10 : i32
    %369 = arith.addi %368, %c10_i32 : i32
    %c0_142 = arith.constant 0 : index
    %370 = arith.index_cast %369 : i32 to index
    %371 = vector.load %arg11[%c0_142, %370] : memref<4x16xf32, #tpu.memory_space<vmem>>, vector<4x1xf32>
    %372 = vector.broadcast %371 : vector<4x1xf32> to vector<4x16xf32>
    %373 = arith.mulf %372, %293 : vector<4x16xf32>
    %c0_143 = arith.constant 0 : index
    %c160_144 = arith.constant 160 : index
    %374 = vector.load %arg12[%c0_143, %c160_144] : memref<4x256xf32, #tpu.memory_space<vmem>>, vector<4x16xf32>
    tpu.vector_store %arg12[%c0_143, %c160_144], %373 {strides = array<i32>} : memref<4x256xf32, #tpu.memory_space<vmem>>, vector<4x16xf32>,
    %c16_i32_145 = arith.constant 16 : i32
    %375 = arith.muli %295, %c16_i32_145 : i32
    %c11_i32 = arith.constant 11 : i32
    %376 = arith.addi %375, %c11_i32 : i32
    %c0_146 = arith.constant 0 : index
    %377 = arith.index_cast %376 : i32 to index
    %378 = vector.load %arg11[%c0_146, %377] : memref<4x16xf32, #tpu.memory_space<vmem>>, vector<4x1xf32>
    %379 = vector.broadcast %378 : vector<4x1xf32> to vector<4x16xf32>
    %380 = arith.mulf %379, %293 : vector<4x16xf32>
    %c0_147 = arith.constant 0 : index
    %c176_148 = arith.constant 176 : index
    %381 = vector.load %arg12[%c0_147, %c176_148] : memref<4x256xf32, #tpu.memory_space<vmem>>, vector<4x16xf32>
    tpu.vector_store %arg12[%c0_147, %c176_148], %380 {strides = array<i32>} : memref<4x256xf32, #tpu.memory_space<vmem>>, vector<4x16xf32>,
    %c16_i32_149 = arith.constant 16 : i32
    %382 = arith.muli %295, %c16_i32_149 : i32
    %c12_i32 = arith.constant 12 : i32
    %383 = arith.addi %382, %c12_i32 : i32
    %c0_150 = arith.constant 0 : index
    %384 = arith.index_cast %383 : i32 to index
    %385 = vector.load %arg11[%c0_150, %384] : memref<4x16xf32, #tpu.memory_space<vmem>>, vector<4x1xf32>
    %386 = vector.broadcast %385 : vector<4x1xf32> to vector<4x16xf32>
    %387 = arith.mulf %386, %293 : vector<4x16xf32>
    %c0_151 = arith.constant 0 : index
    %c192_152 = arith.constant 192 : index
    %388 = vector.load %arg12[%c0_151, %c192_152] : memref<4x256xf32, #tpu.memory_space<vmem>>, vector<4x16xf32>
    tpu.vector_store %arg12[%c0_151, %c192_152], %387 {strides = array<i32>} : memref<4x256xf32, #tpu.memory_space<vmem>>, vector<4x16xf32>,
    %c16_i32_153 = arith.constant 16 : i32
    %389 = arith.muli %295, %c16_i32_153 : i32
    %c13_i32 = arith.constant 13 : i32
    %390 = arith.addi %389, %c13_i32 : i32
    %c0_154 = arith.constant 0 : index
    %391 = arith.index_cast %390 : i32 to index
    %392 = vector.load %arg11[%c0_154, %391] : memref<4x16xf32, #tpu.memory_space<vmem>>, vector<4x1xf32>
    %393 = vector.broadcast %392 : vector<4x1xf32> to vector<4x16xf32>
    %394 = arith.mulf %393, %293 : vector<4x16xf32>
    %c0_155 = arith.constant 0 : index
    %c208_156 = arith.constant 208 : index
    %395 = vector.load %arg12[%c0_155, %c208_156] : memref<4x256xf32, #tpu.memory_space<vmem>>, vector<4x16xf32>
    tpu.vector_store %arg12[%c0_155, %c208_156], %394 {strides = array<i32>} : memref<4x256xf32, #tpu.memory_space<vmem>>, vector<4x16xf32>,
    %c16_i32_157 = arith.constant 16 : i32
    %396 = arith.muli %295, %c16_i32_157 : i32
    %c14_i32 = arith.constant 14 : i32
    %397 = arith.addi %396, %c14_i32 : i32
    %c0_158 = arith.constant 0 : index
    %398 = arith.index_cast %397 : i32 to index
    %399 = vector.load %arg11[%c0_158, %398] : memref<4x16xf32, #tpu.memory_space<vmem>>, vector<4x1xf32>
    %400 = vector.broadcast %399 : vector<4x1xf32> to vector<4x16xf32>
    %401 = arith.mulf %400, %293 : vector<4x16xf32>
    %c0_159 = arith.constant 0 : index
    %c224_160 = arith.constant 224 : index
    %402 = vector.load %arg12[%c0_159, %c224_160] : memref<4x256xf32, #tpu.memory_space<vmem>>, vector<4x16xf32>
    tpu.vector_store %arg12[%c0_159, %c224_160], %401 {strides = array<i32>} : memref<4x256xf32, #tpu.memory_space<vmem>>, vector<4x16xf32>,
    %c16_i32_161 = arith.constant 16 : i32
    %403 = arith.muli %295, %c16_i32_161 : i32
    %c15_i32 = arith.constant 15 : i32
    %404 = arith.addi %403, %c15_i32 : i32
    %c0_162 = arith.constant 0 : index
    %405 = arith.index_cast %404 : i32 to index
    %406 = vector.load %arg11[%c0_162, %405] : memref<4x16xf32, #tpu.memory_space<vmem>>, vector<4x1xf32>
    %407 = vector.broadcast %406 : vector<4x1xf32> to vector<4x16xf32>
    %408 = arith.mulf %407, %293 : vector<4x16xf32>
    %c0_163 = arith.constant 0 : index
    %c240_164 = arith.constant 240 : index
    %409 = vector.load %arg12[%c0_163, %c240_164] : memref<4x256xf32, #tpu.memory_space<vmem>>, vector<4x16xf32>
    tpu.vector_store %arg12[%c0_163, %c240_164], %408 {strides = array<i32>} : memref<4x256xf32, #tpu.memory_space<vmem>>, vector<4x16xf32>,
    %c0_165 = arith.constant 0 : index
    %c0_166 = arith.constant 0 : index
    %410 = arith.index_cast %297 : i32 to index
    %411 = vector.load %arg1[%c0_165, %c0_166, %410] : memref<1x4x256xf32, #tpu.memory_space<vmem>>, vector<1x4x256xf32>
    %412 = vector.shape_cast %411 : vector<1x4x256xf32> to vector<4x256xf32>
    %c0_167 = arith.constant 0 : index
    %c0_168 = arith.constant 0 : index
    %413 = vector.load %arg12[%c0_167, %c0_168] : memref<4x256xf32, #tpu.memory_space<vmem>>, vector<4x256xf32>
    %414 = arith.mulf %412, %413 : vector<4x256xf32>
    %c0_169 = arith.constant 0 : index
    %c0_170 = arith.constant 0 : index
    %415 = arith.index_cast %297 : i32 to index
    %416 = vector.load %arg9[%c0_169, %c0_170, %415] : memref<1x4x256xf32, #tpu.memory_space<vmem>>, vector<1x4x256xf32>
    %417 = vector.shape_cast %416 : vector<1x4x256xf32> to vector<4x256xf32>
    %418 = vector.shape_cast %414 : vector<4x256xf32> to vector<1x4x256xf32>
    tpu.vector_store %arg9[%c0_169, %c0_170, %415], %418 {strides = array<i32>} : memref<1x4x256xf32, #tpu.memory_space<vmem>>, vector<1x4x256xf32>,
    %c1_i32_171 = arith.constant 1 : i32
    return
  }
  func.func @transform_0(%arg0: i32) -> (i32, i32, i32) {
    %c0_i32 = arith.constant 0 : i32
    %c0_i32_0 = arith.constant 0 : i32
    %c0_i32_1 = arith.constant 0 : i32
    return %arg0, %c0_i32, %c0_i32_0 : i32, i32, i32
  }
  func.func @transform_1(%arg0: i32) -> (i32, i32) {
    %c0_i32 = arith.constant 0 : i32
    %c0_i32_0 = arith.constant 0 : i32
    %c0_i32_1 = arith.constant 0 : i32
    return %c0_i32, %c0_i32_0 : i32, i32
  }
  func.func @transform_2(%arg0: i32) -> (i32, i32) {
    %c0_i32 = arith.constant 0 : i32
    %c0_i32_0 = arith.constant 0 : i32
    %c0_i32_1 = arith.constant 0 : i32
    return %c0_i32, %c0_i32_0 : i32, i32
  }
  func.func @transform_3(%arg0: i32) -> (i32, i32) {
    %c0_i32 = arith.constant 0 : i32
    %c0_i32_0 = arith.constant 0 : i32
    %c0_i32_1 = arith.constant 0 : i32
    return %c0_i32, %c0_i32_0 : i32, i32
  }
  func.func @transform_4(%arg0: i32) -> (i32, i32) {
    %c0_i32 = arith.constant 0 : i32
    %c0_i32_0 = arith.constant 0 : i32
    %c0_i32_1 = arith.constant 0 : i32
    return %c0_i32, %c0_i32_0 : i32, i32
  }
  func.func @transform_5(%arg0: i32) -> (i32, i32) {
    %c0_i32 = arith.constant 0 : i32
    %c0_i32_0 = arith.constant 0 : i32
    %c0_i32_1 = arith.constant 0 : i32
    return %c0_i32, %c0_i32_0 : i32, i32
  }
  func.func @transform_6(%arg0: i32) -> (i32, i32) {
    %c0_i32 = arith.constant 0 : i32
    %c0_i32_0 = arith.constant 0 : i32
    %c0_i32_1 = arith.constant 0 : i32
    return %c0_i32, %c0_i32_0 : i32, i32
  }
  func.func @transform_7(%arg0: i32) -> (i32, i32) {
    %c0_i32 = arith.constant 0 : i32
    %c0_i32_0 = arith.constant 0 : i32
    %c0_i32_1 = arith.constant 0 : i32
    return %c0_i32, %c0_i32_0 : i32, i32
  }
  func.func @transform_8(%arg0: i32) -> (i32, i32, i32) {
    %c0_i32 = arith.constant 0 : i32
    %c0_i32_0 = arith.constant 0 : i32
    %c0_i32_1 = arith.constant 0 : i32
    return %arg0, %c0_i32, %c0_i32_0 : i32, i32, i32
  }
}

</mosaic_0001>

<bundles_post_ra>
// kernel: tpu_custom_call.1
= control target key start
LH: loop header
LB: loop body
LE: loop exit
PB: predicated region body
PF: predicated region fallthrough
CT: control target
= control target key end

     0   :  { %13 = vsyncpa [#allocation6], 0  ;;  %s1592_s0 = inlined_call_operand.vmem [shape: f32[2,4,256], index: 0, kind: input, shape index: {}]   ;;  %s1593_s1 = inlined_call_operand.vmem [shape: f32[8,4], index: 1, kind: input, shape index: {}]   ;;  %s1594_s2 = inlined_call_operand.vmem [shape: f32[8,1], index: 2, kind: input, shape index: {}]   ;;  %s1595_s3 = inlined_call_operand.vmem [shape: f32[8,1], index: 3, kind: input, shape index: {}]   ;;  %s1596_s4 = inlined_call_operand.vmem [shape: f32[4,8], index: 4, kind: input, shape index: {}]   ;;  %s1597_s5 = inlined_call_operand.vmem [shape: f32[4,1], index: 5, kind: input, shape index: {}]   ;;  %s1598_s6 = inlined_call_operand.vmem [shape: f32[4,8], index: 6, kind: input, shape index: {}]   ;;  %s1599_s7 = inlined_call_operand.vmem [shape: f32[4,1], index: 7, kind: input, shape index: {}]   ;;  %s1600_s8 = inlined_call_operand.hbm [shape: f32[2,4,256], index: 8, kind: output, shape index: {}]  }
   0x1   :  { %15 = vsyncpa [#allocation6 + $0x1], 0  ;;  %s1280_s27 = smov 0   ;;  %s1282_s28 = smov 0  }
   0x2   :  { %s1284_s29 = smov 0   ;;  %s1286_s30 = smov 0  }
   0x3 LB: > { %s1301_s9 = sadd.s32 4294967295, %s1209_s30   ;;  %s1024_s10 = sadd.s32 4294967294, %s1209_s30   ;;  %s1209_s30 = sphi %s1286_s30, %s1609_s30   ;;  %s1205_s29 = sphi %s1284_s29, %s1608_s29   ;;  %s1201_s28 = sphi %s1282_s28, %s1607_s28   ;;  %s1197_s27 = sphi %s1280_s27, %s1606_s27  }
   0x4   : > { %s1305_s11 = sadd.s32 1, %s1209_s30   ;;  %s201_s12 = sadd.s32 1, %s1205_s29 }
   0x5   : > { %s198_s13 = ssub.s32 %s1209_s30, %s1305_s11  ;;  %p211_p0 = scmp.ne.s32.totalorder %s1205_s29, %s1201_s28 }
   0x6   : > { %p199_p1 = scmp.eq.s32.totalorder %s198_s13, 0  ;;  %p212_p2 = scmp.eq.s32.totalorder %s1301_s9, 1 }
   0x7   : > { %p217_p3 = scmp.ne.s32.totalorder %s1201_s28, %s1197_s27  ;;  %p218_p4 = scmp.eq.s32.totalorder %s1024_s10, 1 }
   0x8   : > { %s1316_s14 = scalar_select %p199_p1, %s1205_s29, %s201_s12  }
   0x9   : > { %p1318_p5 = por %p212_p2, %p211_p0  ;;  %p1322_p6 = por %p218_p4, %p217_p3 }
   0xa   : > { %p1027_p7 = scmp.ge.s32.totalorder %s1209_s30, 1  ;;  %p265_p8 = scmp.lt.s32.totalorder %s1209_s30, 3 }
   0xc   : > { %p266_p9 = pnand %p1027_p7, %p265_p8 }
   0xd   : > { %p299_p10 = scmp.lt.s32.totalorder (!%p266_p9), %s1301_s9, 1  ;;  %vm313_vm0 = vcmask (!%p266_p9), 125952   ;;  %s1211_s22 = smov (!%p266_p9), 96   ;;  %vm317_vm1 = vcmask (!%p266_p9), 3072   ;;  %v1218_v40 = vmov (!%p266_p9), 1   ;;  %v1219_v41 = vmov (!%p266_p9), 0  }
   0xe   : > { %269 = sbr.rel (%p266_p9) target bundleno = 1041 (0x411), region = 52  ;;  %s1212_s23 = smov (!%p266_p9), 64   ;;  %1101 = vset.pattern.permute.xlu1 (!%p266_p9), %v1218_v40  ;;  %1100 = vset.pattern.permute.xlu0 (!%p266_p9), %v1219_v41  ;;  %vm328_vm2 = vcmask (!%p266_p9), 11272   ;;  %vm339_vm3 = vcmask (!%p266_p9), 19472   ;;  %vm350_vm4 = vcmask (!%p266_p9), 27672   ;;  %vm361_vm5 = vcmask (!%p266_p9), 35872  }
   0xf   : > { %s1213_s24 = smov (!%p266_p9), 16   ;;  %s1601_s25 = smov (!%p266_p9), 112   ;;  %vm372_vm6 = vcmask (!%p266_p9), 44072   ;;  %vm383_vm7 = vcmask (!%p266_p9), 52272   ;;  %vm394_vm8 = vcmask (!%p266_p9), 60472   ;;  %vm401_vm9 = vcmask (!%p266_p9), 68672  }
  0x10   : > { %s1215_s26 = smov (!%p266_p9), 80   ;;  %s1216_s10 = smov (!%p266_p9), 48   ;;  %v304_v63 = vld [vmem:[%s1593_s1] sm:$0xff] (!%p266_p9)  ;;  %vm412_vm10 = vcmask (!%p266_p9), 76872   ;;  %vm423_vm11 = vcmask (!%p266_p9), 85072   ;;  %vm434_vm12 = vcmask (!%p266_p9), 93272  }
  0x11   : > { %s1217_s12 = smov (!%p266_p9), 32   ;;  %vm445_vm13 = vcmask (!%p266_p9), 101472   ;;  %vm456_vm14 = vcmask (!%p266_p9), 109672   ;;  %vm467_vm15 = vcmask (!%p266_p9), 117872  }
  0x15   : > { %s300_s17 = scalar_select %p299_p10, %s1301_s9, 1 }
  0x17   : > { %s1036_s18 = sshll.u32 %s300_s17, 3 }
  0x18   : > { %s1333_s21 = scalar_lea.vmem %s1592_s0, %s1036_s18 }
  0x19   : > { %v311_v0 = vld [vmem:[%s1333_s21] sm:$0xf]  ;;  %v396_v29 = vld [vmem:[%s1333_s21 + $0x4] sm:$0xf] }
  0x1a   : > { %v330_v1 = vld [vmem:[%s1333_s21] sm:$0xf]  ;;  %v314_v2 = vsel %vm313_vm0, %v311_v0, 0.0  ;;  %v403_v33 = vld [vmem:[%s1333_s21 + $0x4] sm:$0xf]  ;;  %v398_v34 = vsel %vm313_vm0, %v396_v29, 0.0 }
  0x1b   : > { %332 = vrot.lane.b32.xlu1 %v330_v1, %s1211_s22  ;;  %315 = vadd.xlane.f32.xlu0 %v314_v2  ;;  %v352_v3 = vld [vmem:[%s1333_s21] sm:$0xf]  ;;  %v414_v35 = vld [vmem:[%s1333_s21 + $0x4] sm:$0xf]  ;;  %v1221_v1 = vmov 3  }
  0x1c   : > { %v385_v4 = vld [vmem:[%s1333_s21] sm:$0xf]  ;;  %v436_v36 = vld [vmem:[%s1333_s21 + $0x4] sm:$0xf] }
  0x1d   : > { %v319_v5 = vld [vmem:[%s1333_s21] sm:$0xf]  ;;  %v447_v37 = vld [vmem:[%s1333_s21 + $0x4] sm:$0xf] }
  0x1e   : > { %v341_v6 = vld [vmem:[%s1333_s21] sm:$0xf]  ;;  %v458_v38 = vld [vmem:[%s1333_s21 + $0x4] sm:$0xf] }
  0x1f   : > { %354 = vrot.lane.b32.xlu1 %v352_v3, %s1212_s23  ;;  %v363_v7 = vld [vmem:[%s1333_s21] sm:$0xf]  ;;  %v469_v39 = vld [vmem:[%s1333_s21 + $0x4] sm:$0xf] }
  0x20   : > { %v374_v8 = vld [vmem:[%s1333_s21] sm:$0xf]  ;;  %v425_v62 = vld [vmem:[%s1333_s21 + $0x4] sm:$0xf] }
  0x21   : > { %v305_v2 = vld [vmem:[%s1594_s2] sm:$0xff] }
  0x22   : > { %v306_v3 = vld [vmem:[%s1595_s3] sm:$0xff] }
  0x23   : > { %387 = vrot.lane.b32.xlu1 %v385_v4, %s1213_s24  ;;  %v307_v4 = vld [vmem:[%s1596_s4] sm:$0xf] }
  0x31   : > { %321 = vrot.lane.b32.xlu0 %v319_v5, %s1601_s25  ;;  %v1222_v5 = vmov 4  }
  0x35   : > { %343 = vrot.lane.b32.xlu0 %v341_v6, %s1215_s26  ;;  %v1223_v6 = vmov 5  }
  0x39   : > { %365 = vrot.lane.b32.xlu0 %v363_v7, %s1216_s10  ;;  %v1224_v7 = vmov 7  }
  0x3d   : > { %376 = vrot.lane.b32.xlu0 %v374_v8, %s1217_s12  ;;  %v308_v8 = vld [vmem:[%s1597_s5] sm:$0xf] }
  0x8d   : > { %v333_v10 = vpop.permute.xlu1 %332 }
  0x8e   : > { %v336_v15 = vsel %vm313_vm0, %v333_v10, 0.0 }
  0x91   : > { %v355_v17 = vpop.permute.xlu1 %354 }
  0x92   : > { %v358_v21 = vsel %vm313_vm0, %v355_v17, 0.0 }
  0x95   : > { %v388_v26 = vpop.permute.xlu1 %387 }
  0x96   : > { %v391_v31 = vsel %vm313_vm0, %v388_v26, 0.0 }
  0xa8   : > { %v316_v9 = vpop.xlane.xlu0 %315 }
  0xa9   : > { %318 = vst.msk [vmem:[#allocation2] sm:$0xf] %vm317_vm1, %v316_v9  ;;  %v309_v9 = vld [vmem:[%s1598_s6] sm:$0xf]  ;;  %vm478_vm1 = vcmask 126072  }
  0xac   : > { %v322_v11 = vpop.permute.xlu0 %321 }
  0xad   : > { %v324_v12 = vadd.f32 %v322_v11, %v311_v0  ;;  %v325_v13 = vsel %vm313_vm0, %v322_v11, 0.0  ;;  %v1220_v0 = vmov 2  }
  0xae   : > { %326 = vadd.xlane.f32.xlu1 %v325_v13 }
  0xaf   : > { %v335_v14 = vadd.f32 %v333_v10, %v324_v12  ;;  %v310_v10 = vld [vmem:[%s1599_s7] sm:$0xf] }
  0xb0   : > { %v344_v16 = vpop.permute.xlu0 %343 }
  0xb1   : > { %v346_v18 = vadd.f32 %v344_v16, %v335_v14  ;;  %v347_v19 = vsel %vm313_vm0, %v344_v16, 0.0 }
  0xb2   : > { %337 = vadd.xlane.f32.xlu1 %v336_v15  ;;  %348 = vadd.xlane.f32.xlu0 %v347_v19 }
  0xb3   : > { %v357_v20 = vadd.f32 %v355_v17, %v346_v18  ;;  %v1225_v17 = vmov 6  }
  0xb4   : > { %v366_v22 = vpop.permute.xlu0 %365 }
  0xb5   : > { %v368_v23 = vadd.f32 %v366_v22, %v357_v20  ;;  %v369_v24 = vsel %vm313_vm0, %v366_v22, 0.0 }
  0xb6   : > { %359 = vadd.xlane.f32.xlu0 %v358_v21  ;;  %370 = vadd.xlane.f32.xlu1 %v369_v24 }
  0xb8   : > { %v377_v25 = vpop.permute.xlu0 %376 }
  0xb9   : > { %v379_v27 = vadd.f32 %v377_v25, %v368_v23  ;;  %v380_v28 = vsel %vm313_vm0, %v377_v25, 0.0 }
  0xba   : > { %381 = vadd.xlane.f32.xlu0 %v380_v28 }
  0xbb   : > { %v390_v30 = vadd.f32 %v388_v26, %v379_v27 }
  0xbd   : > { %v397_v32 = vadd.f32 %v396_v29, %v390_v30 }
  0xbe   : > { %392 = vadd.xlane.f32.xlu0 %v391_v31 }
  0xc2   : > { %399 = vadd.xlane.f32.xlu0 %v398_v34 }
  0xc7   : > { %405 = vrot.lane.b32.xlu1 %v403_v33, %s1601_s25  ;;  %v488_v33 = vlaneseq  ;;  %s1605_s25 = smov 112  }
  0xcb   : > { %416 = vrot.lane.b32.xlu1 %v414_v35, %s1211_s22 }
  0xcf   : > { %438 = vrot.lane.b32.xlu1 %v436_v36, %s1212_s23 }
  0xd3   : > { %449 = vrot.lane.b32.xlu1 %v447_v37, %s1216_s10  ;;  %v1457_v37 = vshrl.u32 %v488_v33, 7 }
  0xd7   : > { %460 = vrot.lane.b32.xlu1 %v458_v38, %s1217_s12 }
  0xdb   : > { %471 = vrot.lane.b32.xlu1 %v469_v39, %s1213_s24 }
 0x13b   : > { %v327_v42 = vpop.xlane.xlu1 %326 }
 0x13c   : > { %329 = vst.msk [vmem:[#allocation2] sm:$0xf] %vm328_vm2, %v327_v42  ;;  %v1465_v42 = vsub.s32 0, %v1457_v37  ;;  %vm787_vm2 = vcmask 388352  }
 0x13f   : > { %v338_v43 = vpop.xlane.xlu1 %337  ;;  %v349_v44 = vpop.xlane.xlu0 %348 }
 0x140   : > { %340 = vst.msk [vmem:[#allocation2] sm:$0xf] %vm339_vm3, %v338_v43  ;;  %v1468_v43 = vsub.s32 2, %v1457_v37  ;;  %vm800_vm3 = vcmask 519552  }
 0x141   : > { %351 = vst.msk [vmem:[#allocation2] sm:$0xf] %vm350_vm4, %v349_v44  ;;  %vm813_vm4 = vcmask 650752  }
 0x143   : > { %v371_v45 = vpop.xlane.xlu1 %370  ;;  %v360_v46 = vpop.xlane.xlu0 %359 }
 0x144   : > { %362 = vst.msk [vmem:[#allocation2] sm:$0xf] %vm361_vm5, %v360_v46  ;;  %vm826_vm5 = vcmask 781952  }
 0x145   : > { %373 = vst.msk [vmem:[#allocation2] sm:$0xf] %vm372_vm6, %v371_v45  ;;  %v1472_v45 = vsub.s32 3, %v1457_v37  ;;  %vm839_vm6 = vcmask 913152  }
 0x147   : > { %v406_v47 = vpop.permute.xlu1 %405  ;;  %v382_v48 = vpop.xlane.xlu0 %381 }
 0x148   : > { %v408_v49 = vadd.f32 %v406_v47, %v397_v32  ;;  %v409_v50 = vsel %vm313_vm0, %v406_v47, 0.0  ;;  %384 = vst.msk [vmem:[#allocation2] sm:$0xf] %vm383_vm7, %v382_v48  ;;  %vm852_vm7 = vcmask 1044352  }
 0x149   : > { %410 = vadd.xlane.f32.xlu0 %v409_v50 }
 0x14b   : > { %v417_v51 = vpop.permute.xlu1 %416  ;;  %v393_v52 = vpop.xlane.xlu0 %392 }
 0x14c   : > { %v1375_v53 = vadd.f32 %v417_v51, %v408_v49  ;;  %v420_v54 = vsel %vm313_vm0, %v417_v51, 0.0  ;;  %395 = vst.msk [vmem:[#allocation2] sm:$0xf] %vm394_vm8, %v393_v52 }
 0x14d   : > { %421 = vadd.xlane.f32.xlu1 %v420_v54 }
 0x14f   : > { %v1378_v55 = vpop.permute.xlu1 %438  ;;  %v400_v56 = vpop.xlane.xlu0 %399 }
 0x150   : > { %402 = vst.msk [vmem:[#allocation2] sm:$0xf] %vm401_vm9, %v400_v56  ;;  %v442_v15 = vsel %vm313_vm0, %v1378_v55, 0.0 }
 0x153   : > { %v1380_v57 = vpop.permute.xlu1 %449 }
 0x154   : > { %v453_v58 = vsel %vm313_vm0, %v1380_v57, 0.0 }
 0x155   : > { %454 = vadd.xlane.f32.xlu1 %v453_v58 }
 0x157   : > { %v1384_v59 = vpop.permute.xlu1 %460 }
 0x158   : > { %v464_v16 = vsel %vm313_vm0, %v1384_v59, 0.0 }
 0x15b   : > { %v1386_v60 = vpop.permute.xlu1 %471 }
 0x15c   : > { %v475_v61 = vsel %vm313_vm0, %v1386_v60, 0.0 }
 0x15d   : > { %476 = vadd.xlane.f32.xlu1 %v475_v61 }
 0x15f   : > { %427 = vrot.lane.b32.xlu0 %v425_v62, %s1215_s26 }
 0x16e   : > { %494 = vperm.xlu1 %1101, %v304_v63  }
 0x172   : > { %1102 = vset.pattern.permute.xlu1 %v1220_v0 }
 0x173   : > { %504 = vperm.xlu1 %1102, %v304_v63  }
 0x177   : > { %1103 = vset.pattern.permute.xlu1 %v1221_v1 }
 0x178   : > { %514 = vperm.xlu1 %1103, %v304_v63  }
 0x17c   : > { %1104 = vset.pattern.permute.xlu1 %v1219_v41 }
 0x17d   : > { %525 = vperm.xlu1 %1104, %v305_v2  }
 0x181   : > { %531 = vperm.xlu1 %1104, %v306_v3  }
 0x185   : > { %572 = vperm.xlu1 %1104, %v307_v4  }
 0x189   : > { %1105 = vset.pattern.permute.xlu1 %v1218_v40 }
 0x18a   : > { %581 = vperm.xlu1 %1105, %v307_v4  }
 0x18e   : > { %1106 = vset.pattern.permute.xlu1 %v1220_v0 }
 0x18f   : > { %591 = vperm.xlu1 %1106, %v307_v4  }
 0x193   : > { %1108 = vset.pattern.permute.xlu1 %v1222_v5 }
 0x194   : > { %611 = vperm.xlu1 %1108, %v307_v4  }
 0x198   : > { %1109 = vset.pattern.permute.xlu1 %v1223_v6 }
 0x199   : > { %621 = vperm.xlu1 %1109, %v307_v4  }
 0x19d   : > { %1111 = vset.pattern.permute.xlu1 %v1224_v7 }
 0x19e   : > { %641 = vperm.xlu1 %1111, %v307_v4  }
 0x1a2   : > { %1112 = vset.pattern.permute.xlu1 %v1219_v41 }
 0x1a3   : > { %652 = vperm.xlu1 %1112, %v308_v8  }
 0x1a7   : > { %1114 = vset.pattern.permute.xlu1 %v1218_v40 }
 0x1a8   : > { %674 = vperm.xlu1 %1114, %v309_v9  }
 0x1ac   : > { %1115 = vset.pattern.permute.xlu1 %v1220_v0 }
 0x1ad   : > { %684 = vperm.xlu1 %1115, %v309_v9  }
 0x1b1   : > { %1117 = vset.pattern.permute.xlu1 %v1222_v5 }
 0x1b2   : > { %704 = vperm.xlu1 %1117, %v309_v9  }
 0x1b6   : > { %1118 = vset.pattern.permute.xlu1 %v1223_v6 }
 0x1b7   : > { %714 = vperm.xlu1 %1118, %v309_v9  }
 0x1bb   : > { %1120 = vset.pattern.permute.xlu1 %v1224_v7 }
 0x1bc   : > { %734 = vperm.xlu1 %1120, %v309_v9  }
 0x1c0   : > { %1121 = vset.pattern.permute.xlu1 %v1219_v41 }
 0x1c1   : > { %745 = vperm.xlu1 %1121, %v310_v10  }
 0x1c5   : > { %1123 = vset.pattern.permute.xlu1 %v1218_v40  ;;  %v1460_v40 = vsub.s32 1, %v1457_v37 }
 0x1d6   : > { %v411_v11 = vpop.xlane.xlu0 %410 }
 0x1d7   : > { %413 = vst.msk [vmem:[#allocation2] sm:$0xf] %vm412_vm10, %v411_v11 }
 0x1da   : > { %v428_v12 = vpop.permute.xlu0 %427  ;;  %v422_v13 = vpop.xlane.xlu1 %421 }
 0x1db   : > { %v431_v14 = vsel %vm313_vm0, %v428_v12, 0.0  ;;  %424 = vst.msk [vmem:[#allocation2] sm:$0xf] %vm423_vm11, %v422_v13  ;;  %v430_v26 = vadd.f32 %v428_v12, %v1375_v53 }
 0x1dc   : > { %432 = vadd.xlane.f32.xlu0 %v431_v14 }
 0x1dd   : > { %v441_v28 = vadd.f32 %v1378_v55, %v430_v26 }
 0x1df   : > { %v452_v29 = vadd.f32 %v1380_v57, %v441_v28 }
 0x1e0   : > { %443 = vadd.xlane.f32.xlu0 %v442_v15 }
 0x1e1   : > { %v463_v32 = vadd.f32 %v1384_v59, %v452_v29 }
 0x1e2   : > { %v455_v18 = vpop.xlane.xlu1 %454 }
 0x1e3   : > { %v474_v36 = vadd.f32 %v1386_v60, %v463_v32  ;;  %v616_v32 = vsub.s32 4, %v1457_v37 }
 0x1e4   : > { %465 = vadd.xlane.f32.xlu0 %v464_v16 }
 0x1e5   : > { %v482_v39 = vmul.f32 0.0625, %v474_v36  ;;  %v646_v36 = vsub.s32 7, %v1457_v37 }
 0x1e7   : > { %v548_v44 = vrot.slane %v482_v39, %v1460_v40  ;;  %v543_v46 = vrot.slane %v482_v39, %v1465_v42  ;;  %v554_v49 = vrot.slane %v482_v39, %v1468_v43  ;;  %v560_v55 = vrot.slane %v482_v39, %v1472_v45 }
 0x1ea   : > { %v477_v19 = vpop.xlane.xlu1 %476 }
 0x1ee   : > { %v495_v20 = vpop.permute.xlu1 %494 }
 0x1ef   : > { %v549_v48 = vmul.f32 %v548_v44, %v495_v20 }
 0x1f2   : > { %v505_v21 = vpop.permute.xlu1 %504 }
 0x1f3   : > { %v555_v54 = vmul.f32 %v554_v49, %v505_v21 }
 0x1f7   : > { %v515_v22 = vpop.permute.xlu1 %514 }
 0x1f8   : > { %v561_v60 = vmul.f32 %v560_v55, %v515_v22 }
 0x1fa   : > { %485 = vperm.xlu0 %1100, %v304_v63  }
 0x1fc   : > { %v1440_v23 = vpop.permute.xlu1 %525 }
 0x1fe   : > { %1107 = vset.pattern.permute.xlu0 %v1221_v1 }
 0x1ff   : > { %601 = vperm.xlu0 %1107, %v307_v4  }
 0x200   : > { %v1442_v24 = vpop.permute.xlu1 %531 }
 0x203   : > { %1110 = vset.pattern.permute.xlu0 %v1225_v17 }
 0x204   : > { %631 = vperm.xlu0 %1110, %v307_v4   ;;  %v1444_v25 = vpop.permute.xlu1 %572 }
 0x208   : > { %1113 = vset.pattern.permute.xlu0 %v1219_v41 }
 0x209   : > { %665 = vperm.xlu0 %1113, %v309_v9   ;;  %v1447_v27 = vpop.permute.xlu1 %581 }
 0x20d   : > { %1116 = vset.pattern.permute.xlu0 %v1221_v1 }
 0x20e   : > { %694 = vperm.xlu0 %1116, %v309_v9   ;;  %v1451_v30 = vpop.permute.xlu1 %591 }
 0x212   : > { %1119 = vset.pattern.permute.xlu0 %v1225_v17 }
 0x213   : > { %724 = vperm.xlu0 %1119, %v309_v9   ;;  %v1454_v35 = vpop.permute.xlu1 %611 }
 0x217   : > { %1122 = vset.pattern.permute.xlu0 %v1219_v41 }
 0x218   : > { %v1462_v41 = vpop.permute.xlu1 %621 }
 0x21d   : > { %v1476_v50 = vpop.permute.xlu1 %641 }
 0x222   : > { %v1483_v4 = vpop.permute.xlu1 %652 }
 0x269   : > { %v433_v31 = vpop.xlane.xlu0 %432 }
 0x26a   : > { %435 = vst.msk [vmem:[#allocation2] sm:$0xf] %vm434_vm12, %v433_v31 }
 0x26d   : > { %v444_v34 = vpop.xlane.xlu0 %443 }
 0x26e   : > { %446 = vst.msk [vmem:[#allocation2] sm:$0xf] %vm445_vm13, %v444_v34  ;;  %v626_v34 = vsub.s32 5, %v1457_v37 }
 0x26f   : > { %457 = vst.msk [vmem:[#allocation2] sm:$0xf] %vm456_vm14, %v455_v18  ;;  %v675_v18 = vpop.permute.xlu1 %674 }
 0x271   : > { %v466_v38 = vpop.xlane.xlu0 %465 }
 0x272   : > { %468 = vst.msk [vmem:[#allocation2] sm:$0xf] %vm467_vm15, %v466_v38 }
 0x273   : > { %479 = vst.msk [vmem:[#allocation2] sm:$0xf] %vm478_vm1, %v477_v19  ;;  %v685_v33 = vpop.permute.xlu1 %684 }
 0x279   : > { %v486_v47 = vpop.permute.xlu0 %485 }
 0x27a   : > { %v480_v51 = vld [vmem:[#allocation2] sm:$0xf]  ;;  %v544_v52 = vmul.f32 %v543_v46, %v486_v47 }
 0x27b   : > { %v481_v53 = vmul.f32 0.0625, %v480_v51 }
 0x27c   : > { %v550_v56 = vadd.f32 %v549_v48, %v544_v52 }
 0x27d   : > { %v491_v57 = vrot.slane %v481_v53, %v1465_v42  ;;  %v500_v58 = vrot.slane %v481_v53, %v1460_v40  ;;  %v510_v59 = vrot.slane %v481_v53, %v1468_v43  ;;  %v520_v63 = vrot.slane %v481_v53, %v1472_v45  ;;  %v705_v53 = vpop.permute.xlu1 %704 }
 0x27e   : > { %v556_v61 = vadd.f32 %v555_v54, %v550_v56  ;;  %v602_v14 = vpop.permute.xlu0 %601 }
 0x27f   : > { %v501_v62 = vmul.f32 %v500_v58, %v495_v20  ;;  %v492_v2 = vmul.f32 %v491_v57, %v486_v47  ;;  %v511_v8 = vmul.f32 %v510_v59, %v505_v21  ;;  %v521_v11 = vmul.f32 %v520_v63, %v515_v22 }
 0x280   : > { %v562_v3 = vadd.f32 %v561_v60, %v556_v61 }
 0x281   : > { %v502_v9 = vadd.f32 %v501_v62, %v492_v2 }
 0x282   : > { %v563_v10 = vmul.f32 %v562_v3, %v1440_v23 }
 0x283   : > { %v512_v12 = vadd.f32 %v511_v8, %v502_v9  ;;  %v632_v29 = vpop.permute.xlu0 %631  ;;  %v715_v9 = vpop.permute.xlu1 %714 }
 0x284   : > { %v564_v13 = vadd.f32 %v563_v10, %v1442_v24 }
 0x285   : > { %v522_v15 = vadd.f32 %v521_v11, %v512_v12 }
 0x286   : > { %v565_v16 = vadd.f32 3.0, %v564_v13 }
 0x287   : > { %v528_v19 = vmul.f32 %v1440_v23, %v522_v15  ;;  %v636_v23 = vsub.s32 6, %v1457_v37 }
 0x288   : > { %v566_v20 = vmax.f32 %v565_v16, 0.0  ;;  %v666_v47 = vpop.permute.xlu0 %665 }
 0x289   : > { %v534_v26 = vadd.f32 %v1442_v24, %v528_v19 }
 0x28a   : > { %v567_v28 = vmin.f32 %v566_v20, 6.0 }
 0x28b   : > { %v535_v31 = vadd.f32 3.0, %v534_v26 }
 0x28c   : > { %v568_v21 = vmul.f32 0.16666667, %v567_v28 }
 0x28d   : > { %v536_v22 = vmax.f32 %v535_v31, 0.0  ;;  %v695_v62 = vpop.permute.xlu0 %694  ;;  %v735_v31 = vpop.permute.xlu1 %734 }
 0x28e   : > { %v569_v38 = vmul.f32 %v568_v21, %v564_v13 }
 0x28f   : > { %v537_v39 = vmin.f32 %v536_v22, 6.0 }
 0x290   : > { %v680_v44 = vrot.slane %v569_v38, %v1460_v40  ;;  %v710_v46 = vrot.slane %v569_v38, %v616_v32  ;;  %v671_v24 = vrot.slane %v569_v38, %v1465_v42  ;;  %v720_v49 = vrot.slane %v569_v38, %v626_v34 }
 0x291   : > { %v538_v48 = vmul.f32 0.16666667, %v537_v39  ;;  %v740_v51 = vrot.slane %v569_v38, %v646_v36  ;;  %v690_v56 = vrot.slane %v569_v38, %v1468_v43  ;;  %v700_v57 = vrot.slane %v569_v38, %v1472_v45 }
 0x292   : > { %v681_v52 = vmul.f32 %v680_v44, %v675_v18  ;;  %v672_v54 = vmul.f32 %v671_v24, %v666_v47  ;;  %v730_v58 = vrot.slane %v569_v38, %v636_v23  ;;  %v711_v15 = vmul.f32 %v710_v46, %v705_v53  ;;  %v725_v20 = vpop.permute.xlu0 %724 }
 0x293   : > { %v539_v55 = vmul.f32 %v538_v48, %v534_v26  ;;  %v691_v8 = vmul.f32 %v690_v56, %v685_v33  ;;  %v701_v10 = vmul.f32 %v700_v57, %v695_v62  ;;  %v721_v19 = vmul.f32 %v720_v49, %v715_v9 }
 0x294   : > { %v682_v61 = vadd.f32 %v681_v52, %v672_v54  ;;  %v741_v39 = vmul.f32 %v740_v51, %v735_v31  ;;  %v1227_v54 = vmov 13   ;;  %v1228_v56 = vmov 15  }
 0x295   : > { %v578_v59 = vrot.slane %v539_v55, %v1465_v42  ;;  %v587_v37 = vrot.slane %v539_v55, %v1460_v40  ;;  %v597_v60 = vrot.slane %v539_v55, %v1468_v43  ;;  %v607_v3 = vrot.slane %v539_v55, %v1472_v45 }
 0x296   : > { %v617_v13 = vrot.slane %v539_v55, %v616_v32  ;;  %v692_v42 = vadd.f32 %v691_v8, %v682_v61  ;;  %v627_v43 = vrot.slane %v539_v55, %v626_v34  ;;  %v637_v26 = vrot.slane %v539_v55, %v636_v23 }
 0x297   : > { %v579_v63 = vmul.f32 %v578_v59, %v1444_v25  ;;  %v588_v2 = vmul.f32 %v587_v37, %v1447_v27  ;;  %v598_v12 = vmul.f32 %v597_v60, %v1451_v30  ;;  %v608_v16 = vmul.f32 %v607_v3, %v602_v14 }
 0x298   : > { %v702_v18 = vadd.f32 %v701_v10, %v692_v42  ;;  %v618_v25 = vmul.f32 %v617_v13, %v1454_v35  ;;  %v647_v28 = vrot.slane %v539_v55, %v646_v36  ;;  %v628_v33 = vmul.f32 %v627_v43, %v1462_v41 }
 0x299   : > { %v589_v11 = vadd.f32 %v588_v2, %v579_v63  ;;  %v731_v32 = vmul.f32 %v730_v58, %v725_v20  ;;  %v638_v38 = vmul.f32 %v637_v26, %v632_v29  ;;  %v1229_v57 = vmov 8   ;;  %v746_v2 = vpop.permute.xlu1 %745 }
 0x29a   : > { %v712_v45 = vadd.f32 %v711_v15, %v702_v18  ;;  %v648_v34 = vmul.f32 %v647_v28, %v1476_v50  ;;  %v1231_v37 = vmov 11   ;;  %v1233_v62 = vmov 14  }
 0x29b   : > { %v599_v40 = vadd.f32 %v598_v12, %v589_v11 }
 0x29c   : > { %v722_v30 = vadd.f32 %v721_v19, %v712_v45 }
 0x29d   : > { %v609_v27 = vadd.f32 %v608_v16, %v599_v40 }
 0x29e   : > { %v732_v14 = vadd.f32 %v731_v32, %v722_v30 }
 0x29f   : > { %v619_v21 = vadd.f32 %v618_v25, %v609_v27 }
 0x2a0   : > { %v1507_v46 = vadd.f32 %v741_v39, %v732_v14 }
 0x2a1   : > { %v629_v22 = vadd.f32 %v628_v33, %v619_v21 }
 0x2a2   : > { %v748_v3 = vadd.f32 %v746_v2, %v1507_v46 }
 0x2a3   : > { %v639_v44 = vadd.f32 %v638_v38, %v629_v22 }
 0x2a4   : > { %v749_v8 = vsub.f32 0.0, %v748_v3 }
 0x2a5   : > { %v649_v35 = vadd.f32 %v648_v34, %v639_v44 }
 0x2a6   : > { %v750_v9 = vmul.f32 1.442695, %v749_v8 }
 0x2a7   : > { %v655_v23 = vadd.f32 %v1483_v4, %v649_v35  ;;  %v1226_v4 = vmov 9  }
 0x2a9   : > { %v656_v24 = vsub.f32 0.0, %v655_v23 }
 0x2ab   : > { %v657_v36 = vmul.f32 1.442695, %v656_v24 }
 0x2ad   : > { %1139 = vpow2.f32 %v657_v36 }
 0x2b7   : > { %v1140_v47 = vpop.eup %1139 }
 0x2b8   : > { %v659_v48 = vadd.f32 1.0, %v1140_v47 }
 0x2ba   : > { %1141 = vrcp.f32 %v659_v48 }
 0x2bb   : > { %1143 = vpow2.f32 %v750_v9 }
 0x2c4   : > { %v1142_v41 = vpop.eup %1141 }
 0x2c5   : > { %662 = vst.msk [vmem:[#allocation3] sm:$0xf] %vm313_vm0, %v1142_v41  ;;  %v1144_v10 = vpop.eup %1143 }
 0x2c6   : > { %v752_v11 = vadd.f32 1.0, %v1144_v10 }
 0x2c8   : > { %1145 = vrcp.f32 %v752_v11 }
 0x2cc   : > { %v763_v29 = vld [vmem:[#allocation3] sm:$0xf] }
 0x2cd   : > { %v755_v49 = vld [vmem:[#allocation3] sm:$0xf]  ;;  %766 = vperm.xlu1 %1123, %v763_v29  }
 0x2ce   : > { %758 = vperm.xlu0 %1122, %v755_v49   ;;  %v789_v50 = vld [vmem:[#allocation3] sm:$0xf] }
 0x2cf   : > { %v776_v51 = vld [vmem:[#allocation3] sm:$0xf] }
 0x2d0   : > { %v802_v52 = vld [vmem:[#allocation3] sm:$0xf] }
 0x2d1   : > { %1125 = vset.pattern.permute.xlu1 %v1221_v1  ;;  %v862_v53 = vld [vmem:[#allocation3] sm:$0xf] }
 0x2d2   : > { %1124 = vset.pattern.permute.xlu0 %v1220_v0  ;;  %792 = vperm.xlu1 %1125, %v789_v50   ;;  %v815_v55 = vld [vmem:[#allocation3] sm:$0xf]  ;;  %v1146_v12 = vpop.eup %1145 }
 0x2d3   : > { %779 = vperm.xlu0 %1124, %v776_v51   ;;  %v910_v1 = vld [vmem:[#allocation3] sm:$0xf] }
 0x2d4   : > { %v828_v0 = vld [vmem:[#allocation3] sm:$0xf] }
 0x2d5   : > { %v854_v58 = vld [vmem:[#allocation3] sm:$0xf] }
 0x2d6   : > { %1126 = vset.pattern.permute.xlu1 %v1222_v5  ;;  %v841_v5 = vld [vmem:[#allocation3] sm:$0xf] }
 0x2d7   : > { %1131 = vset.pattern.permute.xlu0 %v1226_v4  ;;  %805 = vperm.xlu1 %1126, %v802_v52   ;;  %v874_v59 = vld [vmem:[#allocation3] sm:$0xf] }
 0x2d8   : > { %865 = vperm.xlu0 %1131, %v862_v53   ;;  %v886_v60 = vld [vmem:[#allocation3] sm:$0xf] }
 0x2d9   : > { %v898_v61 = vld [vmem:[#allocation3] sm:$0xf] }
 0x2da   : > { %v934_v63 = vld [vmem:[#allocation3] sm:$0xf] }
 0x2db   : > { %1127 = vset.pattern.permute.xlu1 %v1223_v6  ;;  %v1230_v6 = vmov 10  }
 0x2dc   : > { %1135 = vset.pattern.permute.xlu0 %v1227_v54  ;;  %818 = vperm.xlu1 %1127, %v815_v55  }
 0x2dd   : > { %913 = vperm.xlu0 %1135, %v910_v1  }
 0x2e0   : > { %1128 = vset.pattern.permute.xlu1 %v1225_v17  ;;  %v1232_v17 = vmov 12  }
 0x2e1   : > { %1138 = vset.pattern.permute.xlu0 %v1228_v56  ;;  %831 = vperm.xlu1 %1128, %v828_v0  }
 0x2e5   : > { %1129 = vset.pattern.permute.xlu1 %v1224_v7  ;;  %v922_v7 = vld [vmem:[#allocation3] sm:$0xf] }
 0x2e6   : > { %844 = vperm.xlu1 %1129, %v841_v5  }
 0x2ea   : > { %1130 = vset.pattern.permute.xlu1 %v1229_v57  ;;  %v946_v57 = vld [vmem:[%s1333_s21] sm:$0xff] }
 0x2eb   : > { %857 = vperm.xlu1 %1130, %v854_v58  }
 0x2ef   : > { %1132 = vset.pattern.permute.xlu1 %v1230_v6 }
 0x2f0   : > { %877 = vperm.xlu1 %1132, %v874_v59  }
 0x2f4   : > { %1133 = vset.pattern.permute.xlu1 %v1231_v37 }
 0x2f5   : > { %889 = vperm.xlu1 %1133, %v886_v60  }
 0x2f9   : > { %1134 = vset.pattern.permute.xlu1 %v1232_v17 }
 0x2fa   : > { %901 = vperm.xlu1 %1134, %v898_v61  }
 0x2fe   : > { %1136 = vset.pattern.permute.xlu1 %v1233_v62 }
 0x2ff   : > { %925 = vperm.xlu1 %1136, %v922_v7  }
 0x303   : > { %1137 = vset.pattern.permute.xlu1 %v1228_v56 }
 0x304   : > { %937 = vperm.xlu1 %1137, %v934_v63  }
 0x34c   : > { %v767_v13 = vpop.permute.xlu1 %766 }
 0x34d   : > { %v759_v42 = vpop.permute.xlu0 %758  ;;  %v769_v15 = vmul.f32 %v1146_v12, %v767_v13 }
 0x34e   : > { %v761_v40 = vmul.f32 %v1146_v12, %v759_v42 }
 0x34f   : > { %771 = vrot.lane.b32.xlu1 %v769_v15, %s1213_s24 }
 0x350   : > { %762 = vst.msk [vmem:[#allocation4] sm:$0xf] %vm313_vm0, %v761_v40 }
 0x351   : > { %v793_v16 = vpop.permute.xlu1 %792 }
 0x352   : > { %v780_v43 = vpop.permute.xlu0 %779  ;;  %v795_v18 = vmul.f32 %v1146_v12, %v793_v16 }
 0x353   : > { %v782_v19 = vmul.f32 %v1146_v12, %v780_v43 }
 0x354   : > { %797 = vrot.lane.b32.xlu0 %v795_v18, %s1216_s10 }
 0x355   : > { %784 = vrot.lane.b32.xlu1 %v782_v19, %s1217_s12 }
 0x356   : > { %v806_v20 = vpop.permute.xlu1 %805 }
 0x357   : > { %v866_v25 = vpop.permute.xlu0 %865  ;;  %v808_v27 = vmul.f32 %v1146_v12, %v806_v20 }
 0x358   : > { %v868_v26 = vmul.f32 %v1146_v12, %v866_v25 }
 0x359   : > { %810 = vrot.lane.b32.xlu0 %v808_v27, %s1212_s23 }
 0x35a   : > { %870 = vrot.lane.b32.xlu1 %v868_v26, %s1213_s24  ;;  %s1037_s24 = sshll.u32 %s1301_s9, 7  ;;  %s1234_s9 = smov [#allocation5]  }
 0x35b   : > { %v819_v45 = vpop.permute.xlu1 %818  ;;  %s1550_s19 = scalar_lea.hbm %s1600_s8, %s1037_s24  ;;  %s1151_s21 = sshll.u32 %s1234_s9, 4  ;;  %s1152_s21 = int_to_ptr.vmem [resolvable:$false] %s1151_s21 }
 0x35c   : > { %v914_v28 = vpop.permute.xlu0 %913  ;;  %v821_v31 = vmul.f32 %v1146_v12, %v819_v45  ;;  %s1153_s17 = scalar_lea.vmem %s1152_s21, 256 }
 0x35d   : > { %v916_v21 = vmul.f32 %v1146_v12, %v914_v28 }
 0x35e   : > { %823 = vrot.lane.b32.xlu0 %v821_v31, %s1215_s26 }
 0x35f   : > { %918 = vrot.lane.b32.xlu1 %v916_v21, %s1215_s26 }
 0x360   : > { %v832_v33 = vpop.permute.xlu1 %831 }
 0x361   : > { %v834_v30 = vmul.f32 %v1146_v12, %v832_v33 }
 0x363   : > { %836 = vrot.lane.b32.xlu0 %v834_v30, %s1211_s22 }
 0x365   : > { %v845_v32 = vpop.permute.xlu1 %844 }
 0x366   : > { %v847_v22 = vmul.f32 %v1146_v12, %v845_v32 }
 0x368   : > { %849 = vrot.lane.b32.xlu0 %v847_v22, %s1605_s25 }
 0x36a   : > { %v858_v38 = vpop.permute.xlu1 %857 }
 0x36b   : > { %v860_v39 = vmul.f32 %v1146_v12, %v858_v38 }
 0x36d   : > { %861 = vst.msk [vmem:[#allocation4 + $0x4] sm:$0xf] %vm313_vm0, %v860_v39  ;;  %vm774_vm0 = vcmask 257152  }
 0x36f   : > { %v878_v14 = vpop.permute.xlu1 %877 }
 0x370   : > { %v880_v34 = vmul.f32 %v1146_v12, %v878_v14 }
 0x372   : > { %882 = vrot.lane.b32.xlu0 %v880_v34, %s1217_s12 }
 0x374   : > { %v890_v44 = vpop.permute.xlu1 %889 }
 0x375   : > { %v892_v46 = vmul.f32 %v1146_v12, %v890_v44 }
 0x377   : > { %894 = vrot.lane.b32.xlu0 %v892_v46, %s1216_s10 }
 0x379   : > { %v902_v35 = vpop.permute.xlu1 %901 }
 0x37a   : > { %v904_v23 = vmul.f32 %v1146_v12, %v902_v35 }
 0x37c   : > { %906 = vrot.lane.b32.xlu0 %v904_v23, %s1212_s23 }
 0x37e   : > { %v926_v24 = vpop.permute.xlu1 %925 }
 0x37f   : > { %v928_v36 = vmul.f32 %v1146_v12, %v926_v24 }
 0x381   : > { %930 = vrot.lane.b32.xlu0 %v928_v36, %s1211_s22  ;;  %s296_s22 = sand.u32 1, %s1201_s28  }
 0x382   : > { %s1028_s23 = sshll.u32 %s296_s22, 3  ;;  %s951_s20 = scalar_lea.sflag [#allocation6], %s296_s22 }
 0x383   : > { %v938_v47 = vpop.permute.xlu1 %937  ;;  %s298_s26 = scalar_lea.vmem [#allocation5], %s1028_s23 }
 0x384   : > { %v940_v48 = vmul.f32 %v1146_v12, %v938_v47  ;;  %s965_s10 = sshll.u32 %s298_s26, 4  ;;  %s1552_s10 = int_to_ptr.vmem [resolvable:$true] %s965_s10 }
 0x385   : > { %s1147_s13 = scalar_lea.vmem %s1552_s10, 128  ;;  %p1154_p0 = scmp.lt.s32.totalorder %s1552_s10, %s1152_s21 }
 0x386   : > { %942 = vrot.lane.b32.xlu1 %v940_v48, %s1605_s25  ;;  %p1148_p11 = scmp.ne.s32.totalorder %s1552_s10, %s1147_s13  ;;  %p1155_p1 = scmp.lt.s32.totalorder %s1153_s17, %s1147_s13 }
 0x388   : > { %p1149_p12 = pnand %p1148_p11, %p1318_p5  ;;  %p1156_p2 = por %p1155_p1, %p1154_p0 }
 0x38a   : > { %p1150_p13 = pneg %p1149_p12 }
 0x38c   : > { %p1157_p3 = pnand %p1156_p2, %p1150_p13 }
 0x3c1   : > { %v772_v41 = vpop.permute.xlu1 %771 }
 0x3c2   : > { %775 = vst.msk [vmem:[#allocation4] sm:$0xf] %vm774_vm0, %v772_v41 }
 0x3c6   : > { %v798_v49 = vpop.permute.xlu0 %797 }
 0x3c7   : > { %v785_v29 = vpop.permute.xlu1 %784 }
 0x3c8   : > { %788 = vst.msk [vmem:[#allocation4] sm:$0xf] %vm787_vm2, %v785_v29 }
 0x3c9   : > { %801 = vst.msk [vmem:[#allocation4] sm:$0xf] %vm800_vm3, %v798_v49 }
 0x3cb   : > { %v811_v51 = vpop.permute.xlu0 %810 }
 0x3cc   : > { %v871_v50 = vpop.permute.xlu1 %870  ;;  %814 = vst.msk [vmem:[#allocation4] sm:$0xf] %vm813_vm4, %v811_v51 }
 0x3cd   : > { %873 = vst.msk [vmem:[#allocation4 + $0x4] sm:$0xf] %vm774_vm0, %v871_v50 }
 0x3d0   : > { %v824_v4 = vpop.permute.xlu0 %823 }
 0x3d1   : > { %827 = vst.msk [vmem:[#allocation4] sm:$0xf] %vm826_vm5, %v824_v4  ;;  %v919_v0 = vpop.permute.xlu1 %918 }
 0x3d5   : > { %v837_v52 = vpop.permute.xlu0 %836 }
 0x3d6   : > { %840 = vst.msk [vmem:[#allocation4] sm:$0xf] %vm839_vm6, %v837_v52 }
 0x3da   : > { %v850_v53 = vpop.permute.xlu0 %849 }
 0x3db   : > { %853 = vst.msk [vmem:[#allocation4] sm:$0xf] %vm852_vm7, %v850_v53 }
 0x3e4   : > { %v883_v54 = vpop.permute.xlu0 %882 }
 0x3e5   : > { %885 = vst.msk [vmem:[#allocation4 + $0x4] sm:$0xf] %vm787_vm2, %v883_v54 }
 0x3e9   : > { %v895_v55 = vpop.permute.xlu0 %894 }
 0x3ea   : > { %897 = vst.msk [vmem:[#allocation4 + $0x4] sm:$0xf] %vm800_vm3, %v895_v55 }
 0x3ee   : > { %v907_v1 = vpop.permute.xlu0 %906 }
 0x3ef   : > { %909 = vst.msk [vmem:[#allocation4 + $0x4] sm:$0xf] %vm813_vm4, %v907_v1 }
 0x3f0   : > { %921 = vst.msk [vmem:[#allocation4 + $0x4] sm:$0xf] %vm826_vm5, %v919_v0 }
 0x3f3   : > { %v931_v56 = vpop.permute.xlu0 %930 }
 0x3f4   : > { %933 = vst.msk [vmem:[#allocation4 + $0x4] sm:$0xf] %vm839_vm6, %v931_v56 }
 0x3f8   : > { %v943_v5 = vpop.permute.xlu1 %942 }
 0x3f9   : > { %945 = vst.msk [vmem:[#allocation4 + $0x4] sm:$0xf] %vm852_vm7, %v943_v5 }
 0x400   : > { %v947_v58 = vld [vmem:[#allocation4] sm:$0xff] }
 0x401   : > { %v948_v6 = vmul.f32 %v947_v58, %v946_v57 }
 0x403   : > { %949 = vst [vmem:[%s298_s26] sm:$0xff] %v948_v6 }
 0x404   : > { %1160 = shalt.err (!%p1157_p3)
}
 0x405   : > { %s1161_s25 = scalar_lea.hbm %s1550_s19, 128  ;;  %s1165_s24 = scalar_lea.hbm %s1600_s8, 256 }
 0x406   : > { %p1162_p4 = scmp.ne.s32.totalorder %s1550_s19, %s1161_s25  ;;  %p1166_p9 = scmp.lt.u32.totalorder %s1550_s19, %s1600_s8 }
 0x407   : > { %p1167_p10 = scmp.lt.u32.totalorder %s1165_s24, %s1161_s25  ;;  %p1169_p12 = scmp.lt.u32.totalorder %s1161_s25, %s1550_s19 }
 0x408   : > { %p1163_p7 = pnand %p1162_p4, %p1318_p5 }
 0x409   : > { %p1168_p11 = por %p1167_p10, %p1166_p9 }
 0x40a   : > { %p1164_p8 = pneg %p1163_p7 }
 0x40b   : > { %p1170_p13 = por %p1169_p12, %p1168_p11 }
 0x40d   : > { %p1171_p0 = pnand %p1170_p13, %p1164_p8 }
 0x40f   : > { %1174 = shalt.err (!%p1171_p0)
}
 0x410   : > { %1038 = dma.vmem_to_hbm [thread:$0]  (%p1318_p5), %s1552_s10, 128, %s1550_s19, %s951_s20  }
 0x411 PF: > { %p1044_p1 = scmp.ge.s32.totalorder %s1209_s30, 2  ;;  %s977_s18 = sand.u32 1, %s1197_s27  }
 0x412   : > { %s978_s13 = scalar_lea.sflag [#allocation6], %s977_s18 }
 0x413   : > { %p1041_p2 = pnand %p1044_p1, %p1322_p6 }
 0x415   : > { %1192 = dma.done.wait (!%p1041_p2), %s978_s13, 128  }
 0x416   : > { %1194 = vsyncadd (!%p1041_p2), %s978_s13, 4294967168  ;;  %p18_p3 = scmp.ge.s32.totalorder %s1305_s11, 4   ;;  %s1606_s27 = smov %s1201_s28 }
 0x417   : > { %s1607_s28 = smov %s1205_s29  ;;  %s1608_s29 = smov %s1316_s14 }
 0x418   : > { %s1609_s30 = smov %s1305_s11  ;;  %20 = sbr.rel (!%p18_p3) target bundleno = 3 (0x3), region = 87 }
 0x41f   :  { %983 = vsyncpa [#allocation6], 1 }
 0x420   :  { %985 = vsyncpa [#allocation6 + $0x1], 1 }

</bundles_post_ra>
